<compile_context>
chip_gen: v7x
topology: tpu7x:2x2x1
jax: 0.10.0
libtpu: 0.0.40
codegen_flags: <defaults>
</compile_context>

<pallas_src>
import numpy as np
import jax
import jax.numpy as jnp
from jax.experimental import pallas as pl
from jax.experimental.pallas import tpu as pltpu

DPAD = 128        # padded feature width (lane dimension)
BN_EPS = 1e-5     # PyTorch BatchNorm1d default eps


# ------------------------------ Pallas kernel -------------------------------

def make_maegin_kernel(num_layers, res_idx):
    """Build the fused forward kernel.

    res_idx[l] is None when layer l has an identity residual (din == dout, so
    the residual matmul is skipped at trace time), otherwise it is the index of
    that layer's residual weight inside the stacked WRES tensor.
    """

    def kernel(alpha_ref,                      # SMEM [2L] f32 (PReLU slopes)
               adj_ref,                        # VMEM [N, N] bf16
               x_ref,                          # VMEM [N, DPAD] f32
               w1_ref, b1_ref,                 # VMEM [L, DPAD, DPAD] bf16, [L, 1, DPAD] f32
               w2_ref, b2_ref,                 # VMEM [L, DPAD, DPAD] bf16, [L, 1, DPAD] f32
               wres_ref,                       # VMEM [Lres, DPAD, DPAD] bf16
               wproj_ref, wtrn_ref, btrn_ref,  # decoder / projection weights
               wprd_ref, bprd_ref,
               out_ref,                        # VMEM [N, DPAD] f32
               x_sc):                          # VMEM scratch [N, DPAD] f32
        # Carry x in a VMEM scratch ref: each layer re-reads through the ref so
        # no N*DPAD SSA value is threaded live across the whole unrolled stack.
        x_sc[...] = x_ref[...]

        def gin_agg(src_ref):
            # GINConv(Identity), eps = 0:  o_i = v_i + sum_{j->i} v_j
            # adjacency & activations in bf16 on the MXU, f32 accumulation.
            # adj is read through the ref at the point of use (never hoisted).
            v = src_ref[...]
            return v + jnp.dot(adj_ref[...], v.astype(jnp.bfloat16),
                               preferred_element_type=jnp.float32)

        # encoder conv layers — statically unrolled (L is small)
        for l in range(num_layers):
            h = gin_agg(x_sc)
            # lr1 with BN1 + bias folded into (w1, b1), then PReLU
            h = jnp.dot(h.astype(jnp.bfloat16), w1_ref[l],
                        preferred_element_type=jnp.float32) + b1_ref[l]
            a1 = alpha_ref[2 * l]
            h = jnp.where(h > 0, h, a1 * h)
            # lr2 with BN2 + bias folded into (w2, b2), then PReLU
            h = jnp.dot(h.astype(jnp.bfloat16), w2_ref[l],
                        preferred_element_type=jnp.float32) + b2_ref[l]
            a2 = alpha_ref[2 * l + 1]
            h = jnp.where(h > 0, h, a2 * h)
            # residual: identity layers skip the matmul entirely
            if res_idx[l] is None:
                x_sc[...] = h + x_sc[...]
            else:
                x_sc[...] = h + jnp.dot(x_sc[...].astype(jnp.bfloat16),
                                        wres_ref[res_idx[l]],
                                        preferred_element_type=jnp.float32)

        # project (Linear, no bias)
        x_sc[...] = jnp.dot(x_sc[...].astype(jnp.bfloat16), wproj_ref[...],
                            preferred_element_type=jnp.float32)
        # decoder: GIN agg -> trn Linear -> prd Linear
        h = gin_agg(x_sc)
        h = jnp.dot(h.astype(jnp.bfloat16), wtrn_ref[...],
                    preferred_element_type=jnp.float32) + btrn_ref[...]
        out_ref[...] = jnp.dot(h.astype(jnp.bfloat16), wprd_ref[...],
                               preferred_element_type=jnp.float32) + bprd_ref[...]

    return kernel


_VMEM = pl.BlockSpec(memory_space=pltpu.MemorySpace.VMEM)
_SMEM = pl.BlockSpec(memory_space=pltpu.MemorySpace.SMEM)


def _vmem_budget(resident_bytes):
    """Per-generation VMEM request: never ask for (near-)physical VMEM.

    v7x: 64 MiB per TensorCore (cap ~52 MiB); v5e/v6e: 128 MiB physical but
    the default scoped limit is only 16/32 MiB, so raising it explicitly keeps
    the bf16 adjacency VMEM-resident for much larger N.
    """
    phys = 128 * 1024 * 1024
    try:
        info = pltpu.get_tpu_info()
        phys = int(getattr(info, "vmem_capacity_bytes", phys))
    except Exception:
        pass
    cap = int(phys * 0.82)                         # headroom for compiler scratch
    need = int(resident_bytes * 1.25) + (4 << 20)  # gridless => no double-buffer 2x
    return max(16 << 20, min(need, cap))


def build_dense_adjacency(edge_index, n):
    """adj[dst, src] = #edges src->dst, cast to bf16 ONCE at setup time.

    bf16 multiplicities are exact up to 256 -- a hard assumption of this kernel.
    """
    adj = jnp.zeros((n, n), jnp.float32).at[edge_index[1], edge_index[0]].add(1.0)
    return adj.astype(jnp.bfloat16)


def maegin_forward_pallas(node_ids, adj_bf16, p):
    # Embedding lookup + .squeeze(1)  (pure gather -> glue in plain JAX)
    x = p["emb"][node_ids[:, 0]]                       # [N, node_dim]
    n, d = x.shape
    x_pad = jnp.zeros((n, DPAD), jnp.float32).at[:, :d].set(x)

    num_layers = len(p["res_idx"])
    n_res_mm = sum(1 for r in p["res_idx"] if r is not None)

    operands = (p["alphas"], adj_bf16, x_pad,
                p["W1"], p["B1"], p["W2"], p["B2"], p["WRES"],
                p["wprojp"], p["wtrnp"], p["btrnp"], p["wprdp"], p["bprdp"])

    # cost estimate: the adjacency aggregation dominates for large N
    agg_flops = 2 * n * n * DPAD
    mm_flops = 2 * n * DPAD * DPAD
    flops = (num_layers * (agg_flops + 2 * mm_flops) + n_res_mm * mm_flops
             + mm_flops                      # project
             + agg_flops + 2 * mm_flops)     # decoder
    bytes_accessed = sum(int(o.size) * o.dtype.itemsize for o in operands) \
        + n * DPAD * 4                       # output
    resident_bytes = bytes_accessed + n * DPAD * 4   # + x scratch
    vmem_bytes = _vmem_budget(resident_bytes)

    kernel = make_maegin_kernel(num_layers, p["res_idx"])
    out_pad = pl.pallas_call(
        kernel,
        out_shape=jax.ShapeDtypeStruct((n, DPAD), jnp.float32),
        in_specs=[_SMEM] + [_VMEM] * 12,
        out_specs=_VMEM,
        scratch_shapes=[pltpu.VMEM((n, DPAD), jnp.float32)],
        compiler_params=pltpu.CompilerParams(vmem_limit_bytes=vmem_bytes),
        cost_estimate=pl.CostEstimate(flops=flops, transcendentals=0,
                                      bytes_accessed=bytes_accessed),
    )(*operands)
    return out_pad[:, : p["node_emb_size"]]


# --------------------------- parameter utilities ----------------------------

def pad_mat(w, dtype=jnp.bfloat16):
    out = jnp.zeros((DPAD, DPAD), jnp.float32)
    return out.at[: w.shape[0], : w.shape[1]].set(w).astype(dtype)


def pad_row(v):
    out = jnp.zeros((1, DPAD), jnp.float32)
    return out.at[0, : v.shape[0]].set(v)


def fold_bn(w, b, bn):
    """Fold eval-mode BatchNorm1d (+ the Linear bias) into the Linear weights."""
    gamma, beta, mean, var = bn
    s = gamma * jax.lax.rsqrt(var + BN_EPS)
    return w * s[None, :], (b - mean) * s + beta


def _linear_init(key, din, dout, bias=True):
    kw, kb = jax.random.split(key)
    lim = 1.0 / np.sqrt(din)
    w = jax.random.uniform(kw, (din, dout), jnp.float32, -lim, lim)   # [in, out]
    b = jax.random.uniform(kb, (dout,), jnp.float32, -lim, lim) if bias else None
    return w, b


def _bn_init(key, d):
    k1, k2, k3, k4 = jax.random.split(key, 4)
    gamma = 1.0 + 0.1 * jax.random.normal(k1, (d,), jnp.float32)
    beta = 0.1 * jax.random.normal(k2, (d,), jnp.float32)
    mean = 0.1 * jax.random.normal(k3, (d,), jnp.float32)
    var = 1.0 + 0.1 * jnp.abs(jax.random.normal(k4, (d,), jnp.float32))
    return gamma, beta, mean, var


def _conv_layer_init(key, din, dh, dout):
    ks = jax.random.split(key, 5)
    w1, b1 = _linear_init(ks[0], din, dh)
    bn1 = _bn_init(ks[1], dh)
    w2, b2 = _linear_init(ks[2], dh, dout)
    bn2 = _bn_init(ks[3], dout)
    res_identity = (din == dout)
    wres = None if res_identity else _linear_init(ks[4], din, dout, bias=False)[0]
    a1 = jnp.float32(0.25)    # PReLU default init
    a2 = jnp.float32(0.25)
    lp = dict(w1=w1, b1=b1, bn1=bn1, a1=a1, w2=w2, b2=b2, bn2=bn2, a2=a2,
              wres=wres, res_identity=res_identity)
    # eval-time BN + bias folding, then pad to the 128-lane kernel layout
    # (weights stored bf16 for MXU throughput; biases stay f32)
    w1f, b1f = fold_bn(w1, b1, bn1)
    w2f, b2f = fold_bn(w2, b2, bn2)
    lp["w1p"] = pad_mat(w1f); lp["b1p"] = pad_row(b1f)
    lp["w2p"] = pad_mat(w2f); lp["b2p"] = pad_row(b2f)
    lp["wresp"] = None if res_identity else pad_mat(wres)
    return lp


def init_maegin(key, node_emb_size, node_emb_dim, hidden_dim, layer_number):
    keys = jax.random.split(key, 16)
    p = dict(node_emb_size=node_emb_size, hidden_dim=hidden_dim)
    # nn.Embedding default init ~ N(0, 1)
    p["emb"] = jax.random.normal(keys[0], (node_emb_size, node_emb_dim), jnp.float32)
    dims = np.linspace(node_emb_dim, hidden_dim, 1 + layer_number + 1 + 1,
                       endpoint=True, dtype=int)
    layers = [_conv_layer_init(keys[1], int(dims[0]), int(dims[0]), int(dims[1]))]
    for i in range(1, 1 + layer_number):
        layers.append(_conv_layer_init(keys[1 + i], int(dims[i]), int(dims[i + 1]),
                                       int(dims[i + 1])))
    layers.append(_conv_layer_init(keys[2 + layer_number],
                                   int(dims[1 + layer_number]),
                                   int(dims[1 + layer_number]),
                                   int(dims[2 + layer_number])))
    p["layers"] = layers

    wproj, _ = _linear_init(keys[10], hidden_dim, hidden_dim, bias=False)
    middle = hidden_dim + int((node_emb_size - hidden_dim) / 2)
    wtrn, btrn = _linear_init(keys[11], hidden_dim, middle)
    wprd, bprd = _linear_init(keys[12], middle, node_emb_size)
    p.update(wproj=wproj, wtrn=wtrn, btrn=btrn, wprd=wprd, bprd=bprd)
    p["wprojp"] = pad_mat(wproj)
    p["wtrnp"] = pad_mat(wtrn); p["btrnp"] = pad_row(btrn)
    p["wprdp"] = pad_mat(wprd); p["bprdp"] = pad_row(bprd)

    # stacked per-layer tensors consumed by the single fused kernel
    p["W1"] = jnp.stack([lp["w1p"] for lp in layers])     # [L, 128, 128] bf16
    p["B1"] = jnp.stack([lp["b1p"] for lp in layers])     # [L, 1, 128] f32
    p["W2"] = jnp.stack([lp["w2p"] for lp in layers])
    p["B2"] = jnp.stack([lp["b2p"] for lp in layers])
    res_idx, res_mats = [], []
    for lp in layers:
        if lp["res_identity"]:
            res_idx.append(None)
        else:
            res_idx.append(len(res_mats))
            res_mats.append(lp["wresp"])
    if not res_mats:   # keep a non-empty operand when every residual is identity
        res_mats.append(jnp.zeros((DPAD, DPAD), jnp.bfloat16))
    p["WRES"] = jnp.stack(res_mats)                       # [Lres, 128, 128] bf16
    p["res_idx"] = tuple(res_idx)
    p["alphas"] = jnp.concatenate(
        [jnp.stack([lp["a1"], lp["a2"]]) for lp in layers])   # [2L] f32
    return p


# ------------------------------- reference -----------------------------------

def maegin_forward_ref(node_ids, adj, p):
    """Plain-JAX, unpadded, unfolded f32 reference mirroring the module in eval()."""
    x = p["emb"][node_ids[:, 0]]
    adj = adj.astype(jnp.float32)
    for lp in p["layers"]:
        h = x + adj @ x
        h = h @ lp["w1"] + lp["b1"]
        g, b, m, v = lp["bn1"]
        h = (h - m) * jax.lax.rsqrt(v + BN_EPS) * g + b
        h = jnp.where(h > 0, h, lp["a1"] * h)
        h = h @ lp["w2"] + lp["b2"]
        g, b, m, v = lp["bn2"]
        h = (h - m) * jax.lax.rsqrt(v + BN_EPS) * g + b
        h = jnp.where(h > 0, h, lp["a2"] * h)
        res = x if lp["wres"] is None else x @ lp["wres"]
        x = h + res
    x = x @ p["wproj"]
    h = x + adj @ x
    h = h @ p["wtrn"] + p["btrn"]
    h = h @ p["wprd"] + p["bprd"]
    return h


if __name__ == "__main__":
    node_emb_size, node_emb_dim, hidden_dim = 32, 16, 8
    dropout_rate, layer_number = 0.1, 3    # dropout inactive in eval mode
    N, E = 16, 48

    key = jax.random.PRNGKey(0)
    k_param, k_ids, k_edge = jax.random.split(key, 3)
    params = init_maegin(k_param, node_emb_size, node_emb_dim, hidden_dim, layer_number)

    # module inputs: x = node ids [N, 1] (Embedding then squeeze(1)), edge_index [2, E]
    node_ids = jax.random.randint(k_ids, (N, 1), 0, node_emb_size, dtype=jnp.int32)
    edge_index = jax.random.randint(k_edge, (2, E), 0, N, dtype=jnp.int32)
    # dense adjacency built ONCE in bf16 at setup (multiplicities are exact)
    adj_bf16 = build_dense_adjacency(edge_index, N)

    out = maegin_forward_pallas(node_ids, adj_bf16, params)
    out = jax.block_until_ready(out)

    ref = maegin_forward_ref(node_ids, adj_bf16, params)
    assert out.shape == (N, node_emb_size), out.shape
    # bf16 MXU inputs everywhere (f32 accumulation) trade <~5% relative error
    # over the full layer stack for 2-4x MXU throughput; f32 reference.
    if not bool(jnp.allclose(out, ref, rtol=5e-2, atol=1.5e-1)):
        raise AssertionError(
            f"mismatch, max abs err = {float(jnp.max(jnp.abs(out - ref)))}")
    print("KERNEL_OK")
</pallas_src>

<mosaic_0001>
module attributes {stable_mosaic.version = 11 : i64} {
  func.func @kernel(%arg0: memref<10xf32, #tpu.memory_space<smem>>, %arg1: memref<16x16xbf16, #tpu.memory_space<vmem>>, %arg2: memref<16x128xf32, #tpu.memory_space<vmem>>, %arg3: memref<5x128x128xbf16, #tpu.memory_space<vmem>>, %arg4: memref<5x1x128xf32, #tpu.memory_space<vmem>>, %arg5: memref<5x128x128xbf16, #tpu.memory_space<vmem>>, %arg6: memref<5x1x128xf32, #tpu.memory_space<vmem>>, %arg7: memref<5x128x128xbf16, #tpu.memory_space<vmem>>, %arg8: memref<128x128xbf16, #tpu.memory_space<vmem>>, %arg9: memref<128x128xbf16, #tpu.memory_space<vmem>>, %arg10: memref<1x128xf32, #tpu.memory_space<vmem>>, %arg11: memref<128x128xbf16, #tpu.memory_space<vmem>>, %arg12: memref<1x128xf32, #tpu.memory_space<vmem>>, %arg13: memref<16x128xf32, #tpu.memory_space<vmem>>, %arg14: memref<16x128xf32, #tpu.memory_space<vmem>>) attributes {dimension_semantics = [], scalar_prefetch = 0 : i64, scratch_operands = 1 : i64, tpu.core_type = #tpu.core_type<tc>} {
    %c0 = arith.constant 0 : index
    %c0_0 = arith.constant 0 : index
    %0 = vector.load %arg2[%c0, %c0_0] : memref<16x128xf32, #tpu.memory_space<vmem>>, vector<16x128xf32>
    %c0_1 = arith.constant 0 : index
    %c0_2 = arith.constant 0 : index
    %1 = vector.load %arg14[%c0_1, %c0_2] : memref<16x128xf32, #tpu.memory_space<vmem>>, vector<16x128xf32>
    tpu.vector_store %arg14[%c0_1, %c0_2], %0 {strides = array<i32>} : memref<16x128xf32, #tpu.memory_space<vmem>>, vector<16x128xf32>,
    %c0_3 = arith.constant 0 : index
    %c0_4 = arith.constant 0 : index
    %2 = vector.load %arg14[%c0_3, %c0_4] : memref<16x128xf32, #tpu.memory_space<vmem>>, vector<16x128xf32>
    %c0_5 = arith.constant 0 : index
    %c0_6 = arith.constant 0 : index
    %3 = vector.load %arg1[%c0_5, %c0_6] : memref<16x16xbf16, #tpu.memory_space<vmem>>, vector<16x16xbf16>
    %4 = arith.truncf %2 : vector<16x128xf32> to vector<16x128xbf16>
    %cst = arith.constant dense<0.000000e+00> : vector<16x128xf32>
    %5 = tpu.matmul %3, %4, %cst {dimension_numbers = #tpu.dot_dimension_numbers<[1], [0], [0], [1], [0, 0, 1, 1], [], []>} : vector<16x16xbf16>, vector<16x128xbf16>, vector<16x128xf32> -> vector<16x128xf32>
    %6 = arith.addf %2, %5 : vector<16x128xf32>
    %7 = arith.truncf %6 : vector<16x128xf32> to vector<16x128xbf16>
    %c0_7 = arith.constant 0 : index
    %c0_8 = arith.constant 0 : index
    %c0_9 = arith.constant 0 : index
    %8 = vector.load %arg3[%c0_7, %c0_8, %c0_9] : memref<5x128x128xbf16, #tpu.memory_space<vmem>>, vector<1x128x128xbf16>
    %9 = vector.shape_cast %8 : vector<1x128x128xbf16> to vector<128x128xbf16>
    %cst_10 = arith.constant dense<0.000000e+00> : vector<16x128xf32>
    %10 = tpu.matmul %7, %9, %cst_10 {dimension_numbers = #tpu.dot_dimension_numbers<[1], [0], [0], [1], [0, 0, 1, 1], [], []>} : vector<16x128xbf16>, vector<128x128xbf16>, vector<16x128xf32> -> vector<16x128xf32>
    %c0_11 = arith.constant 0 : index
    %c0_12 = arith.constant 0 : index
    %c0_13 = arith.constant 0 : index
    %11 = vector.load %arg4[%c0_11, %c0_12, %c0_13] : memref<5x1x128xf32, #tpu.memory_space<vmem>>, vector<1x1x128xf32>
    %12 = vector.shape_cast %11 : vector<1x1x128xf32> to vector<1x128xf32>
    %13 = vector.broadcast %12 : vector<1x128xf32> to vector<16x128xf32>
    %14 = arith.addf %10, %13 : vector<16x128xf32>
    %c0_14 = arith.constant 0 : index
    %15 = memref.load %arg0[%c0_14] : memref<10xf32, #tpu.memory_space<smem>>
    %cst_15 = arith.constant 0.000000e+00 : f32
    %16 = vector.broadcast %cst_15 : f32 to vector<16x128xf32>
    %17 = arith.cmpf ogt, %14, %16 : vector<16x128xf32>
    %18 = vector.broadcast %15 : f32 to vector<16x128xf32>
    %19 = arith.mulf %18, %14 : vector<16x128xf32>
    %20 = arith.select %17, %14, %19 : vector<16x128xi1>, vector<16x128xf32>
    %21 = arith.truncf %20 : vector<16x128xf32> to vector<16x128xbf16>
    %c0_16 = arith.constant 0 : index
    %c0_17 = arith.constant 0 : index
    %c0_18 = arith.constant 0 : index
    %22 = vector.load %arg5[%c0_16, %c0_17, %c0_18] : memref<5x128x128xbf16, #tpu.memory_space<vmem>>, vector<1x128x128xbf16>
    %23 = vector.shape_cast %22 : vector<1x128x128xbf16> to vector<128x128xbf16>
    %cst_19 = arith.constant dense<0.000000e+00> : vector<16x128xf32>
    %24 = tpu.matmul %21, %23, %cst_19 {dimension_numbers = #tpu.dot_dimension_numbers<[1], [0], [0], [1], [0, 0, 1, 1], [], []>} : vector<16x128xbf16>, vector<128x128xbf16>, vector<16x128xf32> -> vector<16x128xf32>
    %c0_20 = arith.constant 0 : index
    %c0_21 = arith.constant 0 : index
    %c0_22 = arith.constant 0 : index
    %25 = vector.load %arg6[%c0_20, %c0_21, %c0_22] : memref<5x1x128xf32, #tpu.memory_space<vmem>>, vector<1x1x128xf32>
    %26 = vector.shape_cast %25 : vector<1x1x128xf32> to vector<1x128xf32>
    %27 = vector.broadcast %26 : vector<1x128xf32> to vector<16x128xf32>
    %28 = arith.addf %24, %27 : vector<16x128xf32>
    %c1 = arith.constant 1 : index
    %29 = memref.load %arg0[%c1] : memref<10xf32, #tpu.memory_space<smem>>
    %cst_23 = arith.constant 0.000000e+00 : f32
    %30 = vector.broadcast %cst_23 : f32 to vector<16x128xf32>
    %31 = arith.cmpf ogt, %28, %30 : vector<16x128xf32>
    %32 = vector.broadcast %29 : f32 to vector<16x128xf32>
    %33 = arith.mulf %32, %28 : vector<16x128xf32>
    %34 = arith.select %31, %28, %33 : vector<16x128xi1>, vector<16x128xf32>
    %c0_24 = arith.constant 0 : index
    %c0_25 = arith.constant 0 : index
    %35 = vector.load %arg14[%c0_24, %c0_25] : memref<16x128xf32, #tpu.memory_space<vmem>>, vector<16x128xf32>
    %36 = arith.truncf %35 : vector<16x128xf32> to vector<16x128xbf16>
    %c0_26 = arith.constant 0 : index
    %c0_27 = arith.constant 0 : index
    %c0_28 = arith.constant 0 : index
    %37 = vector.load %arg7[%c0_26, %c0_27, %c0_28] : memref<5x128x128xbf16, #tpu.memory_space<vmem>>, vector<1x128x128xbf16>
    %38 = vector.shape_cast %37 : vector<1x128x128xbf16> to vector<128x128xbf16>
    %cst_29 = arith.constant dense<0.000000e+00> : vector<16x128xf32>
    %39 = tpu.matmul %36, %38, %cst_29 {dimension_numbers = #tpu.dot_dimension_numbers<[1], [0], [0], [1], [0, 0, 1, 1], [], []>} : vector<16x128xbf16>, vector<128x128xbf16>, vector<16x128xf32> -> vector<16x128xf32>
    %40 = arith.addf %34, %39 : vector<16x128xf32>
    %c0_30 = arith.constant 0 : index
    %c0_31 = arith.constant 0 : index
    %41 = vector.load %arg14[%c0_30, %c0_31] : memref<16x128xf32, #tpu.memory_space<vmem>>, vector<16x128xf32>
    tpu.vector_store %arg14[%c0_30, %c0_31], %40 {strides = array<i32>} : memref<16x128xf32, #tpu.memory_space<vmem>>, vector<16x128xf32>,
    %c0_32 = arith.constant 0 : index
    %c0_33 = arith.constant 0 : index
    %42 = vector.load %arg14[%c0_32, %c0_33] : memref<16x128xf32, #tpu.memory_space<vmem>>, vector<16x128xf32>
    %c0_34 = arith.constant 0 : index
    %c0_35 = arith.constant 0 : index
    %43 = vector.load %arg1[%c0_34, %c0_35] : memref<16x16xbf16, #tpu.memory_space<vmem>>, vector<16x16xbf16>
    %44 = arith.truncf %42 : vector<16x128xf32> to vector<16x128xbf16>
    %cst_36 = arith.constant dense<0.000000e+00> : vector<16x128xf32>
    %45 = tpu.matmul %43, %44, %cst_36 {dimension_numbers = #tpu.dot_dimension_numbers<[1], [0], [0], [1], [0, 0, 1, 1], [], []>} : vector<16x16xbf16>, vector<16x128xbf16>, vector<16x128xf32> -> vector<16x128xf32>
    %46 = arith.addf %42, %45 : vector<16x128xf32>
    %47 = arith.truncf %46 : vector<16x128xf32> to vector<16x128xbf16>
    %c1_37 = arith.constant 1 : index
    %c0_38 = arith.constant 0 : index
    %c0_39 = arith.constant 0 : index
    %48 = vector.load %arg3[%c1_37, %c0_38, %c0_39] : memref<5x128x128xbf16, #tpu.memory_space<vmem>>, vector<1x128x128xbf16>
    %49 = vector.shape_cast %48 : vector<1x128x128xbf16> to vector<128x128xbf16>
    %cst_40 = arith.constant dense<0.000000e+00> : vector<16x128xf32>
    %50 = tpu.matmul %47, %49, %cst_40 {dimension_numbers = #tpu.dot_dimension_numbers<[1], [0], [0], [1], [0, 0, 1, 1], [], []>} : vector<16x128xbf16>, vector<128x128xbf16>, vector<16x128xf32> -> vector<16x128xf32>
    %c1_41 = arith.constant 1 : index
    %c0_42 = arith.constant 0 : index
    %c0_43 = arith.constant 0 : index
    %51 = vector.load %arg4[%c1_41, %c0_42, %c0_43] : memref<5x1x128xf32, #tpu.memory_space<vmem>>, vector<1x1x128xf32>
    %52 = vector.shape_cast %51 : vector<1x1x128xf32> to vector<1x128xf32>
    %53 = vector.broadcast %52 : vector<1x128xf32> to vector<16x128xf32>
    %54 = arith.addf %50, %53 : vector<16x128xf32>
    %c2 = arith.constant 2 : index
    %55 = memref.load %arg0[%c2] : memref<10xf32, #tpu.memory_space<smem>>
    %cst_44 = arith.constant 0.000000e+00 : f32
    %56 = vector.broadcast %cst_44 : f32 to vector<16x128xf32>
    %57 = arith.cmpf ogt, %54, %56 : vector<16x128xf32>
    %58 = vector.broadcast %55 : f32 to vector<16x128xf32>
    %59 = arith.mulf %58, %54 : vector<16x128xf32>
    %60 = arith.select %57, %54, %59 : vector<16x128xi1>, vector<16x128xf32>
    %61 = arith.truncf %60 : vector<16x128xf32> to vector<16x128xbf16>
    %c1_45 = arith.constant 1 : index
    %c0_46 = arith.constant 0 : index
    %c0_47 = arith.constant 0 : index
    %62 = vector.load %arg5[%c1_45, %c0_46, %c0_47] : memref<5x128x128xbf16, #tpu.memory_space<vmem>>, vector<1x128x128xbf16>
    %63 = vector.shape_cast %62 : vector<1x128x128xbf16> to vector<128x128xbf16>
    %cst_48 = arith.constant dense<0.000000e+00> : vector<16x128xf32>
    %64 = tpu.matmul %61, %63, %cst_48 {dimension_numbers = #tpu.dot_dimension_numbers<[1], [0], [0], [1], [0, 0, 1, 1], [], []>} : vector<16x128xbf16>, vector<128x128xbf16>, vector<16x128xf32> -> vector<16x128xf32>
    %c1_49 = arith.constant 1 : index
    %c0_50 = arith.constant 0 : index
    %c0_51 = arith.constant 0 : index
    %65 = vector.load %arg6[%c1_49, %c0_50, %c0_51] : memref<5x1x128xf32, #tpu.memory_space<vmem>>, vector<1x1x128xf32>
    %66 = vector.shape_cast %65 : vector<1x1x128xf32> to vector<1x128xf32>
    %67 = vector.broadcast %66 : vector<1x128xf32> to vector<16x128xf32>
    %68 = arith.addf %64, %67 : vector<16x128xf32>
    %c3 = arith.constant 3 : index
    %69 = memref.load %arg0[%c3] : memref<10xf32, #tpu.memory_space<smem>>
    %cst_52 = arith.constant 0.000000e+00 : f32
    %70 = vector.broadcast %cst_52 : f32 to vector<16x128xf32>
    %71 = arith.cmpf ogt, %68, %70 : vector<16x128xf32>
    %72 = vector.broadcast %69 : f32 to vector<16x128xf32>
    %73 = arith.mulf %72, %68 : vector<16x128xf32>
    %74 = arith.select %71, %68, %73 : vector<16x128xi1>, vector<16x128xf32>
    %c0_53 = arith.constant 0 : index
    %c0_54 = arith.constant 0 : index
    %75 = vector.load %arg14[%c0_53, %c0_54] : memref<16x128xf32, #tpu.memory_space<vmem>>, vector<16x128xf32>
    %76 = arith.truncf %75 : vector<16x128xf32> to vector<16x128xbf16>
    %c1_55 = arith.constant 1 : index
    %c0_56 = arith.constant 0 : index
    %c0_57 = arith.constant 0 : index
    %77 = vector.load %arg7[%c1_55, %c0_56, %c0_57] : memref<5x128x128xbf16, #tpu.memory_space<vmem>>, vector<1x128x128xbf16>
    %78 = vector.shape_cast %77 : vector<1x128x128xbf16> to vector<128x128xbf16>
    %cst_58 = arith.constant dense<0.000000e+00> : vector<16x128xf32>
    %79 = tpu.matmul %76, %78, %cst_58 {dimension_numbers = #tpu.dot_dimension_numbers<[1], [0], [0], [1], [0, 0, 1, 1], [], []>} : vector<16x128xbf16>, vector<128x128xbf16>, vector<16x128xf32> -> vector<16x128xf32>
    %80 = arith.addf %74, %79 : vector<16x128xf32>
    %c0_59 = arith.constant 0 : index
    %c0_60 = arith.constant 0 : index
    %81 = vector.load %arg14[%c0_59, %c0_60] : memref<16x128xf32, #tpu.memory_space<vmem>>, vector<16x128xf32>
    tpu.vector_store %arg14[%c0_59, %c0_60], %80 {strides = array<i32>} : memref<16x128xf32, #tpu.memory_space<vmem>>, vector<16x128xf32>,
    %c0_61 = arith.constant 0 : index
    %c0_62 = arith.constant 0 : index
    %82 = vector.load %arg14[%c0_61, %c0_62] : memref<16x128xf32, #tpu.memory_space<vmem>>, vector<16x128xf32>
    %c0_63 = arith.constant 0 : index
    %c0_64 = arith.constant 0 : index
    %83 = vector.load %arg1[%c0_63, %c0_64] : memref<16x16xbf16, #tpu.memory_space<vmem>>, vector<16x16xbf16>
    %84 = arith.truncf %82 : vector<16x128xf32> to vector<16x128xbf16>
    %cst_65 = arith.constant dense<0.000000e+00> : vector<16x128xf32>
    %85 = tpu.matmul %83, %84, %cst_65 {dimension_numbers = #tpu.dot_dimension_numbers<[1], [0], [0], [1], [0, 0, 1, 1], [], []>} : vector<16x16xbf16>, vector<16x128xbf16>, vector<16x128xf32> -> vector<16x128xf32>
    %86 = arith.addf %82, %85 : vector<16x128xf32>
    %87 = arith.truncf %86 : vector<16x128xf32> to vector<16x128xbf16>
    %c2_66 = arith.constant 2 : index
    %c0_67 = arith.constant 0 : index
    %c0_68 = arith.constant 0 : index
    %88 = vector.load %arg3[%c2_66, %c0_67, %c0_68] : memref<5x128x128xbf16, #tpu.memory_space<vmem>>, vector<1x128x128xbf16>
    %89 = vector.shape_cast %88 : vector<1x128x128xbf16> to vector<128x128xbf16>
    %cst_69 = arith.constant dense<0.000000e+00> : vector<16x128xf32>
    %90 = tpu.matmul %87, %89, %cst_69 {dimension_numbers = #tpu.dot_dimension_numbers<[1], [0], [0], [1], [0, 0, 1, 1], [], []>} : vector<16x128xbf16>, vector<128x128xbf16>, vector<16x128xf32> -> vector<16x128xf32>
    %c2_70 = arith.constant 2 : index
    %c0_71 = arith.constant 0 : index
    %c0_72 = arith.constant 0 : index
    %91 = vector.load %arg4[%c2_70, %c0_71, %c0_72] : memref<5x1x128xf32, #tpu.memory_space<vmem>>, vector<1x1x128xf32>
    %92 = vector.shape_cast %91 : vector<1x1x128xf32> to vector<1x128xf32>
    %93 = vector.broadcast %92 : vector<1x128xf32> to vector<16x128xf32>
    %94 = arith.addf %90, %93 : vector<16x128xf32>
    %c4 = arith.constant 4 : index
    %95 = memref.load %arg0[%c4] : memref<10xf32, #tpu.memory_space<smem>>
    %cst_73 = arith.constant 0.000000e+00 : f32
    %96 = vector.broadcast %cst_73 : f32 to vector<16x128xf32>
    %97 = arith.cmpf ogt, %94, %96 : vector<16x128xf32>
    %98 = vector.broadcast %95 : f32 to vector<16x128xf32>
    %99 = arith.mulf %98, %94 : vector<16x128xf32>
    %100 = arith.select %97, %94, %99 : vector<16x128xi1>, vector<16x128xf32>
    %101 = arith.truncf %100 : vector<16x128xf32> to vector<16x128xbf16>
    %c2_74 = arith.constant 2 : index
    %c0_75 = arith.constant 0 : index
    %c0_76 = arith.constant 0 : index
    %102 = vector.load %arg5[%c2_74, %c0_75, %c0_76] : memref<5x128x128xbf16, #tpu.memory_space<vmem>>, vector<1x128x128xbf16>
    %103 = vector.shape_cast %102 : vector<1x128x128xbf16> to vector<128x128xbf16>
    %cst_77 = arith.constant dense<0.000000e+00> : vector<16x128xf32>
    %104 = tpu.matmul %101, %103, %cst_77 {dimension_numbers = #tpu.dot_dimension_numbers<[1], [0], [0], [1], [0, 0, 1, 1], [], []>} : vector<16x128xbf16>, vector<128x128xbf16>, vector<16x128xf32> -> vector<16x128xf32>
    %c2_78 = arith.constant 2 : index
    %c0_79 = arith.constant 0 : index
    %c0_80 = arith.constant 0 : index
    %105 = vector.load %arg6[%c2_78, %c0_79, %c0_80] : memref<5x1x128xf32, #tpu.memory_space<vmem>>, vector<1x1x128xf32>
    %106 = vector.shape_cast %105 : vector<1x1x128xf32> to vector<1x128xf32>
    %107 = vector.broadcast %106 : vector<1x128xf32> to vector<16x128xf32>
    %108 = arith.addf %104, %107 : vector<16x128xf32>
    %c5 = arith.constant 5 : index
    %109 = memref.load %arg0[%c5] : memref<10xf32, #tpu.memory_space<smem>>
    %cst_81 = arith.constant 0.000000e+00 : f32
    %110 = vector.broadcast %cst_81 : f32 to vector<16x128xf32>
    %111 = arith.cmpf ogt, %108, %110 : vector<16x128xf32>
    %112 = vector.broadcast %109 : f32 to vector<16x128xf32>
    %113 = arith.mulf %112, %108 : vector<16x128xf32>
    %114 = arith.select %111, %108, %113 : vector<16x128xi1>, vector<16x128xf32>
    %c0_82 = arith.constant 0 : index
    %c0_83 = arith.constant 0 : index
    %115 = vector.load %arg14[%c0_82, %c0_83] : memref<16x128xf32, #tpu.memory_space<vmem>>, vector<16x128xf32>
    %116 = arith.truncf %115 : vector<16x128xf32> to vector<16x128xbf16>
    %c2_84 = arith.constant 2 : index
    %c0_85 = arith.constant 0 : index
    %c0_86 = arith.constant 0 : index
    %117 = vector.load %arg7[%c2_84, %c0_85, %c0_86] : memref<5x128x128xbf16, #tpu.memory_space<vmem>>, vector<1x128x128xbf16>
    %118 = vector.shape_cast %117 : vector<1x128x128xbf16> to vector<128x128xbf16>
    %cst_87 = arith.constant dense<0.000000e+00> : vector<16x128xf32>
    %119 = tpu.matmul %116, %118, %cst_87 {dimension_numbers = #tpu.dot_dimension_numbers<[1], [0], [0], [1], [0, 0, 1, 1], [], []>} : vector<16x128xbf16>, vector<128x128xbf16>, vector<16x128xf32> -> vector<16x128xf32>
    %120 = arith.addf %114, %119 : vector<16x128xf32>
    %c0_88 = arith.constant 0 : index
    %c0_89 = arith.constant 0 : index
    %121 = vector.load %arg14[%c0_88, %c0_89] : memref<16x128xf32, #tpu.memory_space<vmem>>, vector<16x128xf32>
    tpu.vector_store %arg14[%c0_88, %c0_89], %120 {strides = array<i32>} : memref<16x128xf32, #tpu.memory_space<vmem>>, vector<16x128xf32>,
    %c0_90 = arith.constant 0 : index
    %c0_91 = arith.constant 0 : index
    %122 = vector.load %arg14[%c0_90, %c0_91] : memref<16x128xf32, #tpu.memory_space<vmem>>, vector<16x128xf32>
    %c0_92 = arith.constant 0 : index
    %c0_93 = arith.constant 0 : index
    %123 = vector.load %arg1[%c0_92, %c0_93] : memref<16x16xbf16, #tpu.memory_space<vmem>>, vector<16x16xbf16>
    %124 = arith.truncf %122 : vector<16x128xf32> to vector<16x128xbf16>
    %cst_94 = arith.constant dense<0.000000e+00> : vector<16x128xf32>
    %125 = tpu.matmul %123, %124, %cst_94 {dimension_numbers = #tpu.dot_dimension_numbers<[1], [0], [0], [1], [0, 0, 1, 1], [], []>} : vector<16x16xbf16>, vector<16x128xbf16>, vector<16x128xf32> -> vector<16x128xf32>
    %126 = arith.addf %122, %125 : vector<16x128xf32>
    %127 = arith.truncf %126 : vector<16x128xf32> to vector<16x128xbf16>
    %c3_95 = arith.constant 3 : index
    %c0_96 = arith.constant 0 : index
    %c0_97 = arith.constant 0 : index
    %128 = vector.load %arg3[%c3_95, %c0_96, %c0_97] : memref<5x128x128xbf16, #tpu.memory_space<vmem>>, vector<1x128x128xbf16>
    %129 = vector.shape_cast %128 : vector<1x128x128xbf16> to vector<128x128xbf16>
    %cst_98 = arith.constant dense<0.000000e+00> : vector<16x128xf32>
    %130 = tpu.matmul %127, %129, %cst_98 {dimension_numbers = #tpu.dot_dimension_numbers<[1], [0], [0], [1], [0, 0, 1, 1], [], []>} : vector<16x128xbf16>, vector<128x128xbf16>, vector<16x128xf32> -> vector<16x128xf32>
    %c3_99 = arith.constant 3 : index
    %c0_100 = arith.constant 0 : index
    %c0_101 = arith.constant 0 : index
    %131 = vector.load %arg4[%c3_99, %c0_100, %c0_101] : memref<5x1x128xf32, #tpu.memory_space<vmem>>, vector<1x1x128xf32>
    %132 = vector.shape_cast %131 : vector<1x1x128xf32> to vector<1x128xf32>
    %133 = vector.broadcast %132 : vector<1x128xf32> to vector<16x128xf32>
    %134 = arith.addf %130, %133 : vector<16x128xf32>
    %c6 = arith.constant 6 : index
    %135 = memref.load %arg0[%c6] : memref<10xf32, #tpu.memory_space<smem>>
    %cst_102 = arith.constant 0.000000e+00 : f32
    %136 = vector.broadcast %cst_102 : f32 to vector<16x128xf32>
    %137 = arith.cmpf ogt, %134, %136 : vector<16x128xf32>
    %138 = vector.broadcast %135 : f32 to vector<16x128xf32>
    %139 = arith.mulf %138, %134 : vector<16x128xf32>
    %140 = arith.select %137, %134, %139 : vector<16x128xi1>, vector<16x128xf32>
    %141 = arith.truncf %140 : vector<16x128xf32> to vector<16x128xbf16>
    %c3_103 = arith.constant 3 : index
    %c0_104 = arith.constant 0 : index
    %c0_105 = arith.constant 0 : index
    %142 = vector.load %arg5[%c3_103, %c0_104, %c0_105] : memref<5x128x128xbf16, #tpu.memory_space<vmem>>, vector<1x128x128xbf16>
    %143 = vector.shape_cast %142 : vector<1x128x128xbf16> to vector<128x128xbf16>
    %cst_106 = arith.constant dense<0.000000e+00> : vector<16x128xf32>
    %144 = tpu.matmul %141, %143, %cst_106 {dimension_numbers = #tpu.dot_dimension_numbers<[1], [0], [0], [1], [0, 0, 1, 1], [], []>} : vector<16x128xbf16>, vector<128x128xbf16>, vector<16x128xf32> -> vector<16x128xf32>
    %c3_107 = arith.constant 3 : index
    %c0_108 = arith.constant 0 : index
    %c0_109 = arith.constant 0 : index
    %145 = vector.load %arg6[%c3_107, %c0_108, %c0_109] : memref<5x1x128xf32, #tpu.memory_space<vmem>>, vector<1x1x128xf32>
    %146 = vector.shape_cast %145 : vector<1x1x128xf32> to vector<1x128xf32>
    %147 = vector.broadcast %146 : vector<1x128xf32> to vector<16x128xf32>
    %148 = arith.addf %144, %147 : vector<16x128xf32>
    %c7 = arith.constant 7 : index
    %149 = memref.load %arg0[%c7] : memref<10xf32, #tpu.memory_space<smem>>
    %cst_110 = arith.constant 0.000000e+00 : f32
    %150 = vector.broadcast %cst_110 : f32 to vector<16x128xf32>
    %151 = arith.cmpf ogt, %148, %150 : vector<16x128xf32>
    %152 = vector.broadcast %149 : f32 to vector<16x128xf32>
    %153 = arith.mulf %152, %148 : vector<16x128xf32>
    %154 = arith.select %151, %148, %153 : vector<16x128xi1>, vector<16x128xf32>
    %c0_111 = arith.constant 0 : index
    %c0_112 = arith.constant 0 : index
    %155 = vector.load %arg14[%c0_111, %c0_112] : memref<16x128xf32, #tpu.memory_space<vmem>>, vector<16x128xf32>
    %156 = arith.truncf %155 : vector<16x128xf32> to vector<16x128xbf16>
    %c3_113 = arith.constant 3 : index
    %c0_114 = arith.constant 0 : index
    %c0_115 = arith.constant 0 : index
    %157 = vector.load %arg7[%c3_113, %c0_114, %c0_115] : memref<5x128x128xbf16, #tpu.memory_space<vmem>>, vector<1x128x128xbf16>
    %158 = vector.shape_cast %157 : vector<1x128x128xbf16> to vector<128x128xbf16>
    %cst_116 = arith.constant dense<0.000000e+00> : vector<16x128xf32>
    %159 = tpu.matmul %156, %158, %cst_116 {dimension_numbers = #tpu.dot_dimension_numbers<[1], [0], [0], [1], [0, 0, 1, 1], [], []>} : vector<16x128xbf16>, vector<128x128xbf16>, vector<16x128xf32> -> vector<16x128xf32>
    %160 = arith.addf %154, %159 : vector<16x128xf32>
    %c0_117 = arith.constant 0 : index
    %c0_118 = arith.constant 0 : index
    %161 = vector.load %arg14[%c0_117, %c0_118] : memref<16x128xf32, #tpu.memory_space<vmem>>, vector<16x128xf32>
    tpu.vector_store %arg14[%c0_117, %c0_118], %160 {strides = array<i32>} : memref<16x128xf32, #tpu.memory_space<vmem>>, vector<16x128xf32>,
    %c0_119 = arith.constant 0 : index
    %c0_120 = arith.constant 0 : index
    %162 = vector.load %arg14[%c0_119, %c0_120] : memref<16x128xf32, #tpu.memory_space<vmem>>, vector<16x128xf32>
    %c0_121 = arith.constant 0 : index
    %c0_122 = arith.constant 0 : index
    %163 = vector.load %arg1[%c0_121, %c0_122] : memref<16x16xbf16, #tpu.memory_space<vmem>>, vector<16x16xbf16>
    %164 = arith.truncf %162 : vector<16x128xf32> to vector<16x128xbf16>
    %cst_123 = arith.constant dense<0.000000e+00> : vector<16x128xf32>
    %165 = tpu.matmul %163, %164, %cst_123 {dimension_numbers = #tpu.dot_dimension_numbers<[1], [0], [0], [1], [0, 0, 1, 1], [], []>} : vector<16x16xbf16>, vector<16x128xbf16>, vector<16x128xf32> -> vector<16x128xf32>
    %166 = arith.addf %162, %165 : vector<16x128xf32>
    %167 = arith.truncf %166 : vector<16x128xf32> to vector<16x128xbf16>
    %c4_124 = arith.constant 4 : index
    %c0_125 = arith.constant 0 : index
    %c0_126 = arith.constant 0 : index
    %168 = vector.load %arg3[%c4_124, %c0_125, %c0_126] : memref<5x128x128xbf16, #tpu.memory_space<vmem>>, vector<1x128x128xbf16>
    %169 = vector.shape_cast %168 : vector<1x128x128xbf16> to vector<128x128xbf16>
    %cst_127 = arith.constant dense<0.000000e+00> : vector<16x128xf32>
    %170 = tpu.matmul %167, %169, %cst_127 {dimension_numbers = #tpu.dot_dimension_numbers<[1], [0], [0], [1], [0, 0, 1, 1], [], []>} : vector<16x128xbf16>, vector<128x128xbf16>, vector<16x128xf32> -> vector<16x128xf32>
    %c4_128 = arith.constant 4 : index
    %c0_129 = arith.constant 0 : index
    %c0_130 = arith.constant 0 : index
    %171 = vector.load %arg4[%c4_128, %c0_129, %c0_130] : memref<5x1x128xf32, #tpu.memory_space<vmem>>, vector<1x1x128xf32>
    %172 = vector.shape_cast %171 : vector<1x1x128xf32> to vector<1x128xf32>
    %173 = vector.broadcast %172 : vector<1x128xf32> to vector<16x128xf32>
    %174 = arith.addf %170, %173 : vector<16x128xf32>
    %c8 = arith.constant 8 : index
    %175 = memref.load %arg0[%c8] : memref<10xf32, #tpu.memory_space<smem>>
    %cst_131 = arith.constant 0.000000e+00 : f32
    %176 = vector.broadcast %cst_131 : f32 to vector<16x128xf32>
    %177 = arith.cmpf ogt, %174, %176 : vector<16x128xf32>
    %178 = vector.broadcast %175 : f32 to vector<16x128xf32>
    %179 = arith.mulf %178, %174 : vector<16x128xf32>
    %180 = arith.select %177, %174, %179 : vector<16x128xi1>, vector<16x128xf32>
    %181 = arith.truncf %180 : vector<16x128xf32> to vector<16x128xbf16>
    %c4_132 = arith.constant 4 : index
    %c0_133 = arith.constant 0 : index
    %c0_134 = arith.constant 0 : index
    %182 = vector.load %arg5[%c4_132, %c0_133, %c0_134] : memref<5x128x128xbf16, #tpu.memory_space<vmem>>, vector<1x128x128xbf16>
    %183 = vector.shape_cast %182 : vector<1x128x128xbf16> to vector<128x128xbf16>
    %cst_135 = arith.constant dense<0.000000e+00> : vector<16x128xf32>
    %184 = tpu.matmul %181, %183, %cst_135 {dimension_numbers = #tpu.dot_dimension_numbers<[1], [0], [0], [1], [0, 0, 1, 1], [], []>} : vector<16x128xbf16>, vector<128x128xbf16>, vector<16x128xf32> -> vector<16x128xf32>
    %c4_136 = arith.constant 4 : index
    %c0_137 = arith.constant 0 : index
    %c0_138 = arith.constant 0 : index
    %185 = vector.load %arg6[%c4_136, %c0_137, %c0_138] : memref<5x1x128xf32, #tpu.memory_space<vmem>>, vector<1x1x128xf32>
    %186 = vector.shape_cast %185 : vector<1x1x128xf32> to vector<1x128xf32>
    %187 = vector.broadcast %186 : vector<1x128xf32> to vector<16x128xf32>
    %188 = arith.addf %184, %187 : vector<16x128xf32>
    %c9 = arith.constant 9 : index
    %189 = memref.load %arg0[%c9] : memref<10xf32, #tpu.memory_space<smem>>
    %cst_139 = arith.constant 0.000000e+00 : f32
    %190 = vector.broadcast %cst_139 : f32 to vector<16x128xf32>
    %191 = arith.cmpf ogt, %188, %190 : vector<16x128xf32>
    %192 = vector.broadcast %189 : f32 to vector<16x128xf32>
    %193 = arith.mulf %192, %188 : vector<16x128xf32>
    %194 = arith.select %191, %188, %193 : vector<16x128xi1>, vector<16x128xf32>
    %c0_140 = arith.constant 0 : index
    %c0_141 = arith.constant 0 : index
    %195 = vector.load %arg14[%c0_140, %c0_141] : memref<16x128xf32, #tpu.memory_space<vmem>>, vector<16x128xf32>
    %196 = arith.truncf %195 : vector<16x128xf32> to vector<16x128xbf16>
    %c4_142 = arith.constant 4 : index
    %c0_143 = arith.constant 0 : index
    %c0_144 = arith.constant 0 : index
    %197 = vector.load %arg7[%c4_142, %c0_143, %c0_144] : memref<5x128x128xbf16, #tpu.memory_space<vmem>>, vector<1x128x128xbf16>
    %198 = vector.shape_cast %197 : vector<1x128x128xbf16> to vector<128x128xbf16>
    %cst_145 = arith.constant dense<0.000000e+00> : vector<16x128xf32>
    %199 = tpu.matmul %196, %198, %cst_145 {dimension_numbers = #tpu.dot_dimension_numbers<[1], [0], [0], [1], [0, 0, 1, 1], [], []>} : vector<16x128xbf16>, vector<128x128xbf16>, vector<16x128xf32> -> vector<16x128xf32>
    %200 = arith.addf %194, %199 : vector<16x128xf32>
    %c0_146 = arith.constant 0 : index
    %c0_147 = arith.constant 0 : index
    %201 = vector.load %arg14[%c0_146, %c0_147] : memref<16x128xf32, #tpu.memory_space<vmem>>, vector<16x128xf32>
    tpu.vector_store %arg14[%c0_146, %c0_147], %200 {strides = array<i32>} : memref<16x128xf32, #tpu.memory_space<vmem>>, vector<16x128xf32>,
    %c0_148 = arith.constant 0 : index
    %c0_149 = arith.constant 0 : index
    %202 = vector.load %arg14[%c0_148, %c0_149] : memref<16x128xf32, #tpu.memory_space<vmem>>, vector<16x128xf32>
    %203 = arith.truncf %202 : vector<16x128xf32> to vector<16x128xbf16>
    %c0_150 = arith.constant 0 : index
    %c0_151 = arith.constant 0 : index
    %204 = vector.load %arg8[%c0_150, %c0_151] : memref<128x128xbf16, #tpu.memory_space<vmem>>, vector<128x128xbf16>
    %cst_152 = arith.constant dense<0.000000e+00> : vector<16x128xf32>
    %205 = tpu.matmul %203, %204, %cst_152 {dimension_numbers = #tpu.dot_dimension_numbers<[1], [0], [0], [1], [0, 0, 1, 1], [], []>} : vector<16x128xbf16>, vector<128x128xbf16>, vector<16x128xf32> -> vector<16x128xf32>
    %c0_153 = arith.constant 0 : index
    %c0_154 = arith.constant 0 : index
    %206 = vector.load %arg14[%c0_153, %c0_154] : memref<16x128xf32, #tpu.memory_space<vmem>>, vector<16x128xf32>
    tpu.vector_store %arg14[%c0_153, %c0_154], %205 {strides = array<i32>} : memref<16x128xf32, #tpu.memory_space<vmem>>, vector<16x128xf32>,
    %c0_155 = arith.constant 0 : index
    %c0_156 = arith.constant 0 : index
    %207 = vector.load %arg14[%c0_155, %c0_156] : memref<16x128xf32, #tpu.memory_space<vmem>>, vector<16x128xf32>
    %c0_157 = arith.constant 0 : index
    %c0_158 = arith.constant 0 : index
    %208 = vector.load %arg1[%c0_157, %c0_158] : memref<16x16xbf16, #tpu.memory_space<vmem>>, vector<16x16xbf16>
    %209 = arith.truncf %207 : vector<16x128xf32> to vector<16x128xbf16>
    %cst_159 = arith.constant dense<0.000000e+00> : vector<16x128xf32>
    %210 = tpu.matmul %208, %209, %cst_159 {dimension_numbers = #tpu.dot_dimension_numbers<[1], [0], [0], [1], [0, 0, 1, 1], [], []>} : vector<16x16xbf16>, vector<16x128xbf16>, vector<16x128xf32> -> vector<16x128xf32>
    %211 = arith.addf %207, %210 : vector<16x128xf32>
    %212 = arith.truncf %211 : vector<16x128xf32> to vector<16x128xbf16>
    %c0_160 = arith.constant 0 : index
    %c0_161 = arith.constant 0 : index
    %213 = vector.load %arg9[%c0_160, %c0_161] : memref<128x128xbf16, #tpu.memory_space<vmem>>, vector<128x128xbf16>
    %cst_162 = arith.constant dense<0.000000e+00> : vector<16x128xf32>
    %214 = tpu.matmul %212, %213, %cst_162 {dimension_numbers = #tpu.dot_dimension_numbers<[1], [0], [0], [1], [0, 0, 1, 1], [], []>} : vector<16x128xbf16>, vector<128x128xbf16>, vector<16x128xf32> -> vector<16x128xf32>
    %c0_163 = arith.constant 0 : index
    %c0_164 = arith.constant 0 : index
    %215 = vector.load %arg10[%c0_163, %c0_164] : memref<1x128xf32, #tpu.memory_space<vmem>>, vector<1x128xf32>
    %216 = vector.broadcast %215 : vector<1x128xf32> to vector<16x128xf32>
    %217 = arith.addf %214, %216 : vector<16x128xf32>
    %218 = arith.truncf %217 : vector<16x128xf32> to vector<16x128xbf16>
    %c0_165 = arith.constant 0 : index
    %c0_166 = arith.constant 0 : index
    %219 = vector.load %arg11[%c0_165, %c0_166] : memref<128x128xbf16, #tpu.memory_space<vmem>>, vector<128x128xbf16>
    %cst_167 = arith.constant dense<0.000000e+00> : vector<16x128xf32>
    %220 = tpu.matmul %218, %219, %cst_167 {dimension_numbers = #tpu.dot_dimension_numbers<[1], [0], [0], [1], [0, 0, 1, 1], [], []>} : vector<16x128xbf16>, vector<128x128xbf16>, vector<16x128xf32> -> vector<16x128xf32>
    %c0_168 = arith.constant 0 : index
    %c0_169 = arith.constant 0 : index
    %221 = vector.load %arg12[%c0_168, %c0_169] : memref<1x128xf32, #tpu.memory_space<vmem>>, vector<1x128xf32>
    %222 = vector.broadcast %221 : vector<1x128xf32> to vector<16x128xf32>
    %223 = arith.addf %220, %222 : vector<16x128xf32>
    %c0_170 = arith.constant 0 : index
    %c0_171 = arith.constant 0 : index
    %224 = vector.load %arg13[%c0_170, %c0_171] : memref<16x128xf32, #tpu.memory_space<vmem>>, vector<16x128xf32>
    tpu.vector_store %arg13[%c0_170, %c0_171], %223 {strides = array<i32>} : memref<16x128xf32, #tpu.memory_space<vmem>>, vector<16x128xf32>,
    return
  }
}

</mosaic_0001>

<bundles_post_ra>
// kernel: tpu_custom_call.1
= control target key start
LH: loop header
LB: loop body
LE: loop exit
PB: predicated region body
PF: predicated region fallthrough
CT: control target
= control target key end

     0   :  { %18 = vsyncpa [#allocation6], 0  ;;  %s4292_s0 = inlined_call_operand.hbm [shape: f32[10], index: 0, kind: input, shape index: {}]   ;;  %s4293_s1 = inlined_call_operand.hbm [shape: bf16[16,16], index: 1, kind: input, shape index: {}]   ;;  %s4294_s2 = inlined_call_operand.hbm [shape: f32[16,128], index: 2, kind: input, shape index: {}]   ;;  %s4295_s3 = inlined_call_operand.hbm [shape: bf16[5,128,128], index: 3, kind: input, shape index: {}]   ;;  %s4296_s4 = inlined_call_operand.vmem [shape: f32[5,1,128], index: 4, kind: input, shape index: {}]   ;;  %s4297_s5 = inlined_call_operand.hbm [shape: bf16[5,128,128], index: 5, kind: input, shape index: {}]   ;;  %s4298_s6 = inlined_call_operand.vmem [shape: f32[5,1,128], index: 6, kind: input, shape index: {}]   ;;  %s4299_s7 = inlined_call_operand.hbm [shape: bf16[5,128,128], index: 7, kind: input, shape index: {}]   ;;  %s4300_s8 = inlined_call_operand.hbm [shape: bf16[128,128], index: 8, kind: input, shape index: {}]   ;;  %s4301_s9 = inlined_call_operand.hbm [shape: bf16[128,128], index: 9, kind: input, shape index: {}]   ;;  %s4302_s10 = inlined_call_operand.vmem [shape: f32[1,128], index: 10, kind: input, shape index: {}]   ;;  %s4303_s11 = inlined_call_operand.hbm [shape: bf16[128,128], index: 11, kind: input, shape index: {}]   ;;  %s4304_s12 = inlined_call_operand.vmem [shape: f32[1,128], index: 12, kind: input, shape index: {}]   ;;  %s4305_s13 = inlined_call_operand.hbm [shape: f32[16,128], index: 13, kind: output, shape index: {}]  }
   0x1   :  { %19 = vsyncpa [#allocation4], 0 }
   0x2   :  { %20 = vsyncpa [#allocation9], 0 }
   0x3   :  { %21 = vsyncpa [#allocation12], 0 }
   0x4   :  { %22 = vsyncpa [#allocation15], 0 }
   0x5   :  { %23 = vsyncpa [#allocation18], 0 }
   0x6   :  { %24 = vsyncpa [#allocation5], 0  ;;  %s3785_s25 = smov [#allocation8]   ;;  %s3563_s29 = scalar_lea.hbm %s4294_s2, 256 }
   0x7   :  { %s50_s26 = sshll.u32 %s3785_s25, 4  ;;  %p3564_p0 = scmp.ne.s32.totalorder %s4294_s2, %s3563_s29  ;;  %s51_s26 = int_to_ptr.vmem [resolvable:$true] %s50_s26 }
   0x8   :  { %p3567_p1 = scmp.lt.u32.totalorder %s3563_s29, %s4294_s2 }
   0xa   :  { %p3569_p2 = pnand %p3567_p1, %p3564_p0 }
   0xc   :  { %3572 = shalt.err (!%p3569_p2)
}
   0xd   :  { %s3573_s17 = scalar_lea.vmem %s51_s26, 256  ;;  %p3578_p4 = scmp.lt.s32.totalorder %s51_s26, %s51_s26 }
   0xe   :  { %p3574_p3 = scmp.ne.s32.totalorder %s51_s26, %s3573_s17  ;;  %p3579_p5 = scmp.lt.s32.totalorder %s3573_s17, %s3573_s17 }
  0x10   :  { %p3580_p6 = por %p3579_p5, %p3578_p4 }
  0x12   :  { %p3581_p7 = pnand %p3580_p6, %p3574_p3 }
  0x14   :  { %3584 = shalt.err (!%p3581_p7)
}
  0x15   :  { %s3786_s18 = smov 128   ;;  %s3787_s19 = smov 8  }
  0x16   :  { %56 = dma.hbm_to_vmem [thread:$0]  %s4294_s2, 256, %s51_s26, [#allocation9], %s3786_s18, %s3786_s18, %s3787_s19  }
  0x17   :  { %s3788_s22 = smov [#allocation11]   ;;  %s3789_s24 = smov [#allocation14]  }
  0x18   :  { %s76_s23 = sshll.u32 %s3788_s22, 4  ;;  %s102_s25 = sshll.u32 %s3789_s24, 4  ;;  %s77_s23 = int_to_ptr.vmem [resolvable:$true] %s76_s23  ;;  %s103_s25 = int_to_ptr.vmem [resolvable:$true] %s102_s25 }
  0x19   :  { %s3585_s29 = scalar_lea.hbm %s4297_s5, 5120 }
  0x1a   :  { %p3586_p8 = scmp.ne.s32.totalorder %s4297_s5, %s3585_s29  ;;  %p3589_p9 = scmp.lt.u32.totalorder %s3585_s29, %s4297_s5 }
  0x1c   :  { %p3591_p10 = pnand %p3589_p9, %p3586_p8 }
  0x1e   :  { %3594 = shalt.err (!%p3591_p10)
}
  0x1f   :  { %s3595_s2 = scalar_lea.vmem %s77_s23, 5120  ;;  %p3600_p12 = scmp.lt.s32.totalorder %s77_s23, %s77_s23 }
  0x20   :  { %p3596_p11 = scmp.ne.s32.totalorder %s77_s23, %s3595_s2  ;;  %p3601_p13 = scmp.lt.s32.totalorder %s3595_s2, %s3595_s2 }
  0x22   :  { %p3602_p0 = por %p3601_p13, %p3600_p12 }
  0x24   :  { %p3603_p1 = pnand %p3602_p0, %p3596_p11 }
  0x26   :  { %3606 = shalt.err (!%p3603_p1)
}
  0x27   :  { %s3790_s26 = smov 64   ;;  %s3791_s17 = smov 4  }
  0x28   :  { %82 = dma.hbm_to_vmem [thread:$0]  %s4297_s5, 5120, %s77_s23, [#allocation12], %s3790_s26, %s3790_s26, %s3791_s17  }
  0x29   :  { %s3607_s27 = scalar_lea.hbm %s4300_s8, 1024 }
  0x2a   :  { %p3608_p2 = scmp.ne.s32.totalorder %s4300_s8, %s3607_s27  ;;  %p3611_p3 = scmp.lt.u32.totalorder %s3607_s27, %s4300_s8 }
  0x2c   :  { %p3613_p4 = pnand %p3611_p3, %p3608_p2 }
  0x2e   :  { %3616 = shalt.err (!%p3613_p4)
}
  0x2f   :  { %s3617_s15 = scalar_lea.vmem %s103_s25, 1024  ;;  %p3622_p6 = scmp.lt.s32.totalorder %s103_s25, %s103_s25 }
  0x30   :  { %p3618_p5 = scmp.ne.s32.totalorder %s103_s25, %s3617_s15  ;;  %p3623_p7 = scmp.lt.s32.totalorder %s3617_s15, %s3617_s15 }
  0x32   :  { %p3624_p8 = por %p3623_p7, %p3622_p6 }
  0x34   :  { %p3625_p9 = pnand %p3624_p8, %p3618_p5 }
  0x36   :  { %3628 = shalt.err (!%p3625_p9)
}
  0x37   :  { %108 = dma.hbm_to_vmem [thread:$0]  %s4300_s8, 1024, %s103_s25, [#allocation15], %s3790_s26, %s3790_s26, %s3791_s17  }
  0x38   :  { %s3629_s20 = scalar_lea.hbm %s4292_s0, 16 }
  0x39   :  { %p3630_p10 = scmp.ne.s32.totalorder %s4292_s0, %s3629_s20  ;;  %p3633_p11 = scmp.lt.u32.totalorder %s3629_s20, %s4292_s0 }
  0x3b   :  { %p3635_p12 = pnand %p3633_p11, %p3630_p10 }
  0x3d   :  { %3638 = shalt.err (!%p3635_p12)
}
  0x3e   :  { %s3792_s28 = smov [#allocation3]   ;;  %s3793_s8 = smov [#allocation7]  }
  0x3f   :  { %32 = dma.hbm_to_smem %s4292_s0, 16, %s3792_s28, [#allocation6]  }
  0x40   :  { %s38_s25 = sshll.u32 %s3793_s8, 4  ;;  %s3794_s14 = smov [#allocation10]   ;;  %s39_s25 = int_to_ptr.vmem [resolvable:$true] %s38_s25 }
  0x41   :  { %s62_s15 = sshll.u32 %s3794_s14, 4  ;;  %s3639_s16 = scalar_lea.hbm %s4293_s1, 128  ;;  %s3928_s15 = int_to_ptr.vmem [resolvable:$true] %s62_s15 }
  0x42   :  { %p3640_p13 = scmp.ne.s32.totalorder %s4293_s1, %s3639_s16  ;;  %p3643_p0 = scmp.lt.u32.totalorder %s3639_s16, %s4293_s1 }
  0x44   :  { %p3645_p1 = pnand %p3643_p0, %p3640_p13 }
  0x46   :  { %3648 = shalt.err (!%p3645_p1)
}
  0x47   :  { %s3649_s0 = scalar_lea.vmem %s39_s25, 128  ;;  %p3654_p3 = scmp.lt.s32.totalorder %s39_s25, %s39_s25 }
  0x48   :  { %p3650_p2 = scmp.ne.s32.totalorder %s39_s25, %s3649_s0  ;;  %p3655_p4 = scmp.lt.s32.totalorder %s3649_s0, %s3649_s0 }
  0x4a   :  { %p3656_p5 = por %p3655_p4, %p3654_p3 }
  0x4c   :  { %p3657_p6 = pnand %p3656_p5, %p3650_p2 }
  0x4e   :  { %3660 = shalt.err (!%p3657_p6)
}
  0x4f   :  { %44 = dma.hbm_to_vmem [thread:$0]  %s4293_s1, 128, %s39_s25, [#allocation4], %s3790_s26, %s3790_s26, %s3791_s17  }
  0x50   :  { %s3661_s30 = scalar_lea.hbm %s4295_s3, 5120 }
  0x51   :  { %p3662_p7 = scmp.ne.s32.totalorder %s4295_s3, %s3661_s30  ;;  %p3665_p8 = scmp.lt.u32.totalorder %s3661_s30, %s4295_s3 }
  0x53   :  { %p3667_p9 = pnand %p3665_p8, %p3662_p7 }
  0x55   :  { %3670 = shalt.err (!%p3667_p9)
}
  0x56   :  { %s3671_s16 = scalar_lea.vmem %s3928_s15, 5120  ;;  %p3676_p11 = scmp.lt.s32.totalorder %s3928_s15, %s3928_s15 }
  0x57   :  { %p3672_p10 = scmp.ne.s32.totalorder %s3928_s15, %s3671_s16  ;;  %p3677_p12 = scmp.lt.s32.totalorder %s3671_s16, %s3671_s16 }
  0x59   :  { %p3678_p13 = por %p3677_p12, %p3676_p11 }
  0x5b   :  { %p3679_p0 = pnand %p3678_p13, %p3672_p10 }
  0x5d   :  { %3682 = shalt.err (!%p3679_p0)
}
  0x5e   :  { %68 = dma.hbm_to_vmem [thread:$0]  %s4295_s3, 5120, %s3928_s15, [#allocation9], %s3790_s26, %s3790_s26, %s3791_s17  }
  0x5f   :  { %s3795_s2 = smov [#allocation13]   ;;  %s3796_s21 = smov [#allocation16]  }
  0x60   :  { %s90_s20 = sshll.u32 %s3795_s2, 4  ;;  %s114_s22 = sshll.u32 %s3796_s21, 4  ;;  %s91_s20 = int_to_ptr.vmem [resolvable:$true] %s90_s20  ;;  %s3965_s22 = int_to_ptr.vmem [resolvable:$true] %s114_s22 }
  0x61   :  { %s3683_s27 = scalar_lea.hbm %s4299_s7, 5120 }
  0x62   :  { %p3684_p1 = scmp.ne.s32.totalorder %s4299_s7, %s3683_s27  ;;  %p3687_p2 = scmp.lt.u32.totalorder %s3683_s27, %s4299_s7 }
  0x64   :  { %p3689_p3 = pnand %p3687_p2, %p3684_p1 }
  0x66   :  { %3692 = shalt.err (!%p3689_p3)
}
  0x67   :  { %s3693_s3 = scalar_lea.vmem %s91_s20, 5120  ;;  %p3698_p5 = scmp.lt.s32.totalorder %s91_s20, %s91_s20 }
  0x68   :  { %p3694_p4 = scmp.ne.s32.totalorder %s91_s20, %s3693_s3  ;;  %p3699_p6 = scmp.lt.s32.totalorder %s3693_s3, %s3693_s3 }
  0x6a   :  { %p3700_p7 = por %p3699_p6, %p3698_p5 }
  0x6c   :  { %p3701_p8 = pnand %p3700_p7, %p3694_p4 }
  0x6e   :  { %3704 = shalt.err (!%p3701_p8)
}
  0x6f   :  { %96 = dma.hbm_to_vmem [thread:$0]  %s4299_s7, 5120, %s91_s20, [#allocation12], %s3790_s26, %s3790_s26, %s3791_s17  }
  0x70   :  { %s3705_s16 = scalar_lea.hbm %s4301_s9, 1024 }
  0x71   :  { %p3706_p9 = scmp.ne.s32.totalorder %s4301_s9, %s3705_s16  ;;  %p3709_p10 = scmp.lt.u32.totalorder %s3705_s16, %s4301_s9 }
  0x73   :  { %p3711_p11 = pnand %p3709_p10, %p3706_p9 }
  0x75   :  { %3714 = shalt.err (!%p3711_p11)
}
  0x76   :  { %s3715_s0 = scalar_lea.vmem %s3965_s22, 1024  ;;  %p3720_p13 = scmp.lt.s32.totalorder %s3965_s22, %s3965_s22 }
  0x77   :  { %p3716_p12 = scmp.ne.s32.totalorder %s3965_s22, %s3715_s0  ;;  %p3721_p0 = scmp.lt.s32.totalorder %s3715_s0, %s3715_s0 }
  0x79   :  { %p3722_p1 = por %p3721_p0, %p3720_p13 }
  0x7b   :  { %p3723_p2 = pnand %p3722_p1, %p3716_p12 }
  0x7d   :  { %3726 = shalt.err (!%p3723_p2)
}
  0x7e   :  { %120 = dma.hbm_to_vmem [thread:$0]  %s4301_s9, 1024, %s3965_s22, [#allocation15], %s3790_s26, %s3790_s26, %s3791_s17  }
  0x7f   :  { %s3797_s24 = smov [#allocation17]   ;;  %s3727_s30 = scalar_lea.hbm %s4303_s11, 1024 }
  0x80   :  { %s128_s27 = sshll.u32 %s3797_s24, 4  ;;  %p3728_p3 = scmp.ne.s32.totalorder %s4303_s11, %s3727_s30  ;;  %s129_s27 = int_to_ptr.vmem [resolvable:$true] %s128_s27 }
  0x81   :  { %p3731_p4 = scmp.lt.u32.totalorder %s3727_s30, %s4303_s11 }
  0x83   :  { %p3733_p5 = pnand %p3731_p4, %p3728_p3 }
  0x85   :  { %3736 = shalt.err (!%p3733_p5)
}
  0x86   :  { %s3737_s5 = scalar_lea.vmem %s129_s27, 1024  ;;  %p3742_p7 = scmp.lt.s32.totalorder %s129_s27, %s129_s27 }
  0x87   :  { %p3738_p6 = scmp.ne.s32.totalorder %s129_s27, %s3737_s5  ;;  %p3743_p8 = scmp.lt.s32.totalorder %s3737_s5, %s3737_s5 }
  0x89   :  { %p3744_p9 = por %p3743_p8, %p3742_p7 }
  0x8b   :  { %p3745_p10 = pnand %p3744_p9, %p3738_p6 }
  0x8d   :  { %3748 = shalt.err (!%p3745_p10)
}
  0x8e   :  { %134 = dma.hbm_to_vmem [thread:$0]  %s4303_s11, 1024, %s129_s27, [#allocation18], %s3790_s26, %s3790_s26, %s3791_s17  }
  0x8f   :  { %3771 = dma.done.wait [#allocation6], 16  }
  0x90   :  { %3772 = vsyncadd [#allocation6], 4294967280 }
  0x91   :  { %3773 = dma.done.wait [#allocation4], 128  }
  0x92   :  { %3774 = vsyncadd [#allocation4], 4294967168 }
  0x93   :  { %3775 = dma.done.wait [#allocation9], 5376  }
  0x94   :  { %3776 = vsyncadd [#allocation9], 4294961920 }
  0x95   :  { %3777 = dma.done.wait [#allocation12], 10240  }
  0x96   :  { %3778 = vsyncadd [#allocation12], 4294957056 }
  0x97   :  { %3779 = dma.done.wait [#allocation15], 2048  }
  0x98   :  { %3780 = vsyncadd [#allocation15], 4294965248 }
  0x99   :  { %3781 = dma.done.wait [#allocation18], 1024  }
  0x9a   :  { %3782 = vsyncadd [#allocation18], 4294966272 }
  0x9b   :  { %164 = sfence }
  0x9c   :  { %v166_v0 = vld [vmem:[#allocation8] sm:$0xff]  ;;  %v167_v1 = vld [vmem:[#allocation8 + $0x8] sm:$0xff]  ;;  %v3798_v2 = vmov 0.0   ;;  %vm3799_vm0 = vmmov 0   ;;  %v3413_v4 = vld [vmem:[#allocation7] sm:$0xff]   ;;  %vm180_vm1 = vcmask 130048  }
  0x9d   :  { %3001 = vmatprep.subr.bf16.mxu0 %v3798_v2  ;;  %v4018_v3 = vpack.c.bf16 %v167_v1, %v166_v0  ;;  %3003 = vmatprep.mubr.msk.bf16.mxu0 %vm3799_vm0, %v3798_v2  ;;  %v3414_v5 = vld [vmem:[#allocation10] sm:$0xff]   ;;  %v3415_v6 = vld [vmem:[#allocation10 + $0x8] sm:$0xff]   ;;  %v3416_v7 = vld [vmem:[#allocation10 + $0x10] sm:$0xff]   ;;  %s340_s11 = sld [smem:[#allocation3]]  ;;  %s2662_s23 = sld [smem:[#allocation3 + $0x1]] }
  0x9e   :  { %3007 = vmatprep.subr.bf16.mxu1 %v3798_v2  ;;  %3023 = vmatprep.mubr.msk.bf16.mxu1 %vm3799_vm0, %v3798_v2  ;;  %v3417_v8 = vld [vmem:[#allocation10 + $0x18] sm:$0xff]   ;;  %v3418_v9 = vld [vmem:[#allocation10 + $0x20] sm:$0xff]   ;;  %v3419_v10 = vld [vmem:[#allocation10 + $0x28] sm:$0xff]   ;;  %s2683_s25 = sld [smem:[#allocation3 + $0x2]]  ;;  %s2694_s0 = sld [smem:[#allocation3 + $0x3]] }
  0x9f   :  { %3002 = vmatpush3.bf16.msra.mxu0 %v4018_v3  ;;  %3008 = vmatpush3.bf16.msra.mxu1 %v3414_v5  ;;  %v3420_v11 = vld [vmem:[#allocation10 + $0x30] sm:$0xff]   ;;  %v3421_v12 = vld [vmem:[#allocation10 + $0x38] sm:$0xff]   ;;  %v3422_v13 = vld [vmem:[#allocation11] sm:$0xff]   ;;  %s2715_s24 = sld [smem:[#allocation3 + $0x4]]  ;;  %s2726_s29 = sld [smem:[#allocation3 + $0x5]] }
  0xa0   :  { %3027 = vmatprep.subr.bf16.mxu0 %v3798_v2  ;;  %3009 = vmatprep.subr.bf16.mxu1 %v3798_v2  ;;  %v3424_v14 = vld [vmem:[#allocation11 + $0x8] sm:$0xff]   ;;  %v3426_v15 = vld [vmem:[#allocation11 + $0x10] sm:$0xff]   ;;  %v3428_v16 = vld [vmem:[#allocation11 + $0x18] sm:$0xff]   ;;  %s2747_s3 = sld [smem:[#allocation3 + $0x6]]  ;;  %s2758_s5 = sld [smem:[#allocation3 + $0x7]] }
  0xa1   :  { %v3430_v17 = vld [vmem:[#allocation11 + $0x20] sm:$0xff]   ;;  %v3432_v18 = vld [vmem:[#allocation11 + $0x28] sm:$0xff]   ;;  %v3427_v28 = vld [vmem:[#allocation13 + $0x10] sm:$0xff]   ;;  %s3800_s21 = smov [#allocation19]  }
  0xa2   :  { %3004 = vmatmul.mubr.msk.bf16.vlgmr.msra.gmra.mrb[0].mxu0 %vm180_vm1, %v3413_v4  ;;  %v3423_v25 = vld [vmem:[#allocation13] sm:$0xff]   ;;  %v3425_v27 = vld [vmem:[#allocation13 + $0x8] sm:$0xff]   ;;  %v3429_v29 = vld [vmem:[#allocation13 + $0x18] sm:$0xff]  }
  0xa3   :  { %3043 = vmatprep.mubr.msk.bf16.mxu0 %vm3799_vm0, %v3798_v2  ;;  %3010 = vmatpush3.bf16.msra.mxu1 %v3415_v6  ;;  %v3431_v30 = vld [vmem:[#allocation13 + $0x20] sm:$0xff]   ;;  %v3433_v31 = vld [vmem:[#allocation13 + $0x28] sm:$0xff]   ;;  %v3434_v32 = vld [vmem:[#allocation11 + $0x30] sm:$0xff]   ;;  %v343_v38 = vstv %s340_s11  ;;  %v464_v55 = vstv %s2662_s23  ;;  %s2779_s11 = sld [smem:[#allocation3 + $0x8]] }
  0xa4   :  { %3011 = vmatprep.subr.bf16.mxu1 %v3798_v2  ;;  %3028 = vmatpush3.bf16.msra.mxu0 %v3422_v13  ;;  %v3435_v33 = vld [vmem:[#allocation13 + $0x30] sm:$0xff]   ;;  %v3436_v34 = vld [vmem:[#allocation11 + $0x38] sm:$0xff]   ;;  %v3438_v5 = vld [vmem:[#allocation7] sm:$0xff]  }
  0xa5   :  { %3029 = vmatprep.subr.bf16.mxu0 %v3798_v2  ;;  %v3437_v35 = vld [vmem:[#allocation13 + $0x38] sm:$0xff]   ;;  %v3439_v6 = vld [vmem:[#allocation10 + $0x40] sm:$0xff]  }
  0xa6   :  { %v2644_v36 = vld [vmem:[%s4296_s4] ss:$0 sm:$0xff] }
  0xa7   :  { %3012 = vmatpush3.bf16.msra.mxu1 %v3416_v7  ;;  %v2653_v53 = vld [vmem:[%s4298_s6] ss:$0 sm:$0xff]  ;;  %v3440_v7 = vld [vmem:[#allocation10 + $0x48] sm:$0xff]  }
  0xa8   :  { %3013 = vmatprep.subr.bf16.mxu1 %v3798_v2  ;;  %3030 = vmatpush3.bf16.msra.mxu0 %v3424_v14  ;;  %v3446_v13 = vld [vmem:[#allocation10 + $0x78] sm:$0xff]   ;;  %v3455_v14 = vld [vmem:[#allocation11 + $0x40] sm:$0xff]  }
  0xa9   :  { %3031 = vmatprep.subr.bf16.mxu0 %v3798_v2 }
  0xab   :  { %3014 = vmatpush3.bf16.msra.mxu1 %v3417_v8  ;;  %v3441_v8 = vld [vmem:[#allocation10 + $0x50] sm:$0xff]  }
  0xac   :  { %3015 = vmatprep.subr.bf16.mxu1 %v3798_v2  ;;  %3032 = vmatpush3.bf16.msra.mxu0 %v3426_v15  ;;  %v3456_v15 = vld [vmem:[#allocation11 + $0x48] sm:$0xff]  }
  0xad   :  { %3033 = vmatprep.subr.bf16.mxu0 %v3798_v2 }
  0xaf   :  { %3016 = vmatpush3.bf16.msra.mxu1 %v3418_v9  ;;  %v3442_v9 = vld [vmem:[#allocation10 + $0x58] sm:$0xff]  }
  0xb0   :  { %3017 = vmatprep.subr.bf16.mxu1 %v3798_v2  ;;  %3034 = vmatpush3.bf16.msra.mxu0 %v3428_v16  ;;  %v3457_v16 = vld [vmem:[#allocation11 + $0x50] sm:$0xff]  }
  0xb1   :  { %3035 = vmatprep.subr.bf16.mxu0 %v3798_v2 }
  0xb3   :  { %3018 = vmatpush3.bf16.msra.mxu1 %v3419_v10  ;;  %v3443_v10 = vld [vmem:[#allocation10 + $0x60] sm:$0xff]  }
  0xb4   :  { %3019 = vmatprep.subr.bf16.mxu1 %v3798_v2  ;;  %3036 = vmatpush3.bf16.msra.mxu0 %v3430_v17  ;;  %v3458_v17 = vld [vmem:[#allocation11 + $0x58] sm:$0xff]  }
  0xb5   :  { %3037 = vmatprep.subr.bf16.mxu0 %v3798_v2 }
  0xb7   :  { %3020 = vmatpush3.bf16.msra.mxu1 %v3420_v11  ;;  %v3444_v11 = vld [vmem:[#allocation10 + $0x68] sm:$0xff]  }
  0xb8   :  { %3021 = vmatprep.subr.bf16.mxu1 %v3798_v2  ;;  %3038 = vmatpush3.bf16.msra.mxu0 %v3432_v18  ;;  %v3459_v18 = vld [vmem:[#allocation11 + $0x60] sm:$0xff]  }
  0xb9   :  { %3039 = vmatprep.subr.bf16.mxu0 %v3798_v2 }
  0xbb   :  { %3022 = vmatpush3.bf16.msra.mxu1 %v3421_v12  ;;  %v3445_v12 = vld [vmem:[#allocation10 + $0x70] sm:$0xff]  }
  0xbc   :  { %3047 = vmatprep.subr.bf16.mxu1 %v3798_v2  ;;  %3040 = vmatpush3.bf16.msra.mxu0 %v3434_v32  ;;  %v3452_v32 = vld [vmem:[#allocation13 + $0x68] sm:$0xff]  }
  0xbd   :  { %3041 = vmatprep.subr.bf16.mxu0 %v3798_v2 }
  0xc0   :  { %3042 = vmatpush3.bf16.msra.mxu0 %v3436_v34  ;;  %v3454_v34 = vld [vmem:[#allocation13 + $0x78] sm:$0xff]  }
  0xc1   :  { %3067 = vmatprep.subr.bf16.mxu0 %v3798_v2 }
 0x175   :  { %v218_v19 = vpop.f32.mrb[0].mxu0 }
 0x176   :  { %v3005_v20 = vpop.f32.mrb[1].mxu0  ;;  %v225_v22 = vadd.f32 %v218_v19, %v166_v0  ;;  %v3460_v19 = vld [vmem:[#allocation11 + $0x68] sm:$0xff]  }
 0x177   :  { %v221_v21 = vpop.f32.mrb[2].mxu0 }
 0x178   :  { %v226_v23 = vadd.f32 %v221_v21, %v167_v1  ;;  %v3006_v24 = vpop.f32.mrb[3].mxu0 }
 0x17a   :  { %v227_v26 = vpack.c.bf16 %v226_v23, %v225_v22 }
 0x17c   :  { %3024 = vmatmul.mubr.bf16.vlgmr.msra.gmra.mrb[0].mxu1 %v227_v26  ;;  %v3447_v26 = vld [vmem:[#allocation13 + $0x40] sm:$0xff]  }
 0x17d   :  { %3048 = vmatpush3.bf16.msra.mxu1 %v3423_v25  ;;  %3063 = vmatprep.mubr.msk.bf16.mxu1 %vm3799_vm0, %v3798_v2 }
 0x17e   :  { %3049 = vmatprep.subr.bf16.mxu1 %v3798_v2 }
 0x181   :  { %3050 = vmatpush3.bf16.msra.mxu1 %v3425_v27 }
 0x182   :  { %3051 = vmatprep.subr.bf16.mxu1 %v3798_v2 }
 0x185   :  { %3052 = vmatpush3.bf16.msra.mxu1 %v3427_v28  ;;  %v3448_v28 = vld [vmem:[#allocation13 + $0x48] sm:$0xff]  }
 0x186   :  { %3053 = vmatprep.subr.bf16.mxu1 %v3798_v2 }
 0x189   :  { %3054 = vmatpush3.bf16.msra.mxu1 %v3429_v29  ;;  %v3449_v29 = vld [vmem:[#allocation13 + $0x50] sm:$0xff]  }
 0x18a   :  { %3055 = vmatprep.subr.bf16.mxu1 %v3798_v2 }
 0x18d   :  { %3056 = vmatpush3.bf16.msra.mxu1 %v3431_v30  ;;  %v3450_v30 = vld [vmem:[#allocation13 + $0x58] sm:$0xff]  }
 0x18e   :  { %3057 = vmatprep.subr.bf16.mxu1 %v3798_v2 }
 0x191   :  { %3058 = vmatpush3.bf16.msra.mxu1 %v3433_v31  ;;  %v3451_v31 = vld [vmem:[#allocation13 + $0x60] sm:$0xff]  }
 0x192   :  { %3059 = vmatprep.subr.bf16.mxu1 %v3798_v2 }
 0x195   :  { %3060 = vmatpush3.bf16.msra.mxu1 %v3435_v33  ;;  %v3453_v33 = vld [vmem:[#allocation13 + $0x70] sm:$0xff]  }
 0x196   :  { %3061 = vmatprep.subr.bf16.mxu1 %v3798_v2 }
 0x199   :  { %3062 = vmatpush3.bf16.msra.mxu1 %v3437_v35  ;;  %v3461_v35 = vld [vmem:[#allocation11 + $0x70] sm:$0xff]  }
 0x19a   :  { %3093 = vmatprep.subr.bf16.mxu1 %v3798_v2 }
 0x19c   :  { %3064 = vmatmul.mubr.bf16.vlgmr.msra.gmra.mrb[4].mxu1 %v4018_v3 }
 0x19d   :  { %3109 = vmatprep.mubr.msk.bf16.mxu1 %vm3799_vm0, %v3798_v2  ;;  %3094 = vmatpush3.bf16.msra.mxu1 %v3455_v14  ;;  %v3471_v14 = vld [vmem:[#allocation10 + $0xb8] sm:$0xff]  }
 0x19e   :  { %3095 = vmatprep.subr.bf16.mxu1 %v3798_v2 }
 0x1a1   :  { %3096 = vmatpush3.bf16.msra.mxu1 %v3456_v15  ;;  %v3480_v15 = vld [vmem:[#allocation11 + $0x80] sm:$0xff]  }
 0x1a2   :  { %3097 = vmatprep.subr.bf16.mxu1 %v3798_v2 }
 0x1a5   :  { %3098 = vmatpush3.bf16.msra.mxu1 %v3457_v16  ;;  %v3481_v16 = vld [vmem:[#allocation11 + $0x88] sm:$0xff]  }
 0x1a6   :  { %3099 = vmatprep.subr.bf16.mxu1 %v3798_v2 }
 0x1a9   :  { %3100 = vmatpush3.bf16.msra.mxu1 %v3458_v17  ;;  %v3482_v17 = vld [vmem:[#allocation11 + $0x90] sm:$0xff]  }
 0x1aa   :  { %3101 = vmatprep.subr.bf16.mxu1 %v3798_v2 }
 0x1ad   :  { %3102 = vmatpush3.bf16.msra.mxu1 %v3459_v18  ;;  %v3483_v18 = vld [vmem:[#allocation11 + $0x98] sm:$0xff]  }
 0x1ae   :  { %3103 = vmatprep.subr.bf16.mxu1 %v3798_v2 }
 0x1b1   :  { %3104 = vmatpush3.bf16.msra.mxu1 %v3460_v19  ;;  %v3484_v19 = vld [vmem:[#allocation11 + $0xa0] sm:$0xff]  }
 0x1b2   :  { %3105 = vmatprep.subr.bf16.mxu1 %v3798_v2 }
 0x1b5   :  { %3106 = vmatpush3.bf16.msra.mxu1 %v3461_v35  ;;  %v3479_v35 = vld [vmem:[#allocation13 + $0xb8] sm:$0xff]  }
 0x1b6   :  { %3107 = vmatprep.subr.bf16.mxu1 %v3798_v2 }
 0x24f   :  { %v333_v37 = vpop.f32.mrb[0].mxu1 }
 0x250   :  { %v334_v39 = vadd.f32 %v2644_v36, %v333_v37  ;;  %v3025_v40 = vpop.f32.mrb[1].mxu1  ;;  %v2674_v37 = vld [vmem:[%s4296_s4 + $0x1] ss:$0 sm:$0xff] }
 0x251   :  { %v336_v41 = vpop.f32.mrb[2].mxu1 }
 0x252   :  { %v344_v42 = vmul.f32 %v343_v38, %v334_v39  ;;  %v337_v43 = vadd.f32 %v2644_v36, %v336_v41  ;;  %v3026_v44 = vpop.f32.mrb[3].mxu1  ;;  %vm341_vm2 = vcmp.gt.f32.partialorder %v334_v39, 0.0  ;;  %v3462_v36 = vld [vmem:[#allocation11 + $0x78] sm:$0xff]  }
 0x253   :  { %3108 = vmatpush3.bf16.msra.mxu1 %v3462_v36  ;;  %v3486_v36 = vld [vmem:[#allocation11 + $0xb0] sm:$0xff]  }
 0x254   :  { %vm342_vm3 = vcmp.gt.f32.partialorder %v337_v43, 0.0  ;;  %v345_v45 = vmul.f32 %v343_v38, %v337_v43  ;;  %v346_v46 = vsel %vm341_vm2, %v334_v39, %v344_v42  ;;  %3133 = vmatprep.subr.bf16.mxu1 %v3798_v2  ;;  %v752_v39 = vstv %s2683_s25 }
 0x256   :  { %v347_v47 = vsel %vm342_vm3, %v337_v43, %v345_v45 }
 0x257   :  { %v348_v48 = vpack.c.bf16 %v347_v47, %v346_v46 }
 0x259   :  { %3044 = vmatmul.mubr.bf16.vlgmr.msra.gmra.mrb[4].mxu0 %v348_v48 }
 0x25a   :  { %3069 = vmatprep.mubr.msk.bf16.mxu0 %vm3799_vm0, %v3798_v2 }
 0x26f   :  { %v567_v49 = vpop.f32.mrb[4].mxu1 }
 0x270   :  { %v3065_v50 = vpop.f32.mrb[5].mxu1 }
 0x271   :  { %v570_v51 = vpop.f32.mrb[6].mxu1 }
 0x272   :  { %v3066_v52 = vpop.f32.mrb[7].mxu1 }
 0x32c   :  { %v454_v54 = vpop.f32.mrb[4].mxu0 }
 0x32d   :  { %v455_v56 = vadd.f32 %v2653_v53, %v454_v54  ;;  %v3045_v57 = vpop.f32.mrb[5].mxu0  ;;  %v2685_v54 = vld [vmem:[%s4298_s6 + $0x1] ss:$0 sm:$0xff] }
 0x32e   :  { %v457_v58 = vpop.f32.mrb[6].mxu0 }
 0x32f   :  { %v465_v59 = vmul.f32 %v464_v55, %v455_v56  ;;  %v458_v60 = vadd.f32 %v2653_v53, %v457_v58  ;;  %vm462_vm4 = vcmp.gt.f32.partialorder %v455_v56, 0.0  ;;  %v3046_v61 = vpop.f32.mrb[7].mxu0 }
 0x331   :  { %v466_v62 = vmul.f32 %v464_v55, %v458_v60  ;;  %v467_v63 = vsel %vm462_vm4, %v455_v56, %v465_v59  ;;  %vm463_vm5 = vcmp.gt.f32.partialorder %v458_v60, 0.0  ;;  %v875_v56 = vstv %s2694_s0  ;;  %s2625_s0 = sshll.u32 %s3800_s21, 4  ;;  %s2626_s0 = int_to_ptr.vmem [resolvable:$true] %s2625_s0 }
 0x332   :  { %v574_v0 = vadd.f32 %v567_v49, %v467_v63  ;;  %p3754_p12 = scmp.lt.s32.totalorder %s2626_s0, %s2626_s0 }
 0x333   :  { %v468_v1 = vsel %vm463_vm5, %v458_v60, %v466_v62 }
 0x334   :  { %v575_v3 = vadd.f32 %v570_v51, %v468_v1 }
 0x336   :  { %v4067_v4 = vpack.c.bf16 %v575_v3, %v574_v0 }
 0x338   :  { %3068 = vmatpush3.bf16.msra.mxu0 %v4067_v4 }
 0x339   :  { %3073 = vmatprep.subr.bf16.mxu0 %v3798_v2 }
 0x33b   :  { %3070 = vmatmul.mubr.msk.bf16.vlgmr.msra.gmra.mrb[8].mxu0 %vm180_vm1, %v3438_v5 }
 0x33c   :  { %3074 = vmatpush3.bf16.msra.mxu0 %v3439_v6  ;;  %3089 = vmatprep.mubr.msk.bf16.mxu0 %vm3799_vm0, %v3798_v2  ;;  %v3463_v6 = vld [vmem:[#allocation7] sm:$0xff]  }
 0x33d   :  { %3075 = vmatprep.subr.bf16.mxu0 %v3798_v2 }
 0x340   :  { %3076 = vmatpush3.bf16.msra.mxu0 %v3440_v7  ;;  %v3464_v7 = vld [vmem:[#allocation10 + $0x80] sm:$0xff]  }
 0x341   :  { %3077 = vmatprep.subr.bf16.mxu0 %v3798_v2 }
 0x344   :  { %3078 = vmatpush3.bf16.msra.mxu0 %v3441_v8  ;;  %v3465_v8 = vld [vmem:[#allocation10 + $0x88] sm:$0xff]  }
 0x345   :  { %3079 = vmatprep.subr.bf16.mxu0 %v3798_v2 }
 0x348   :  { %3080 = vmatpush3.bf16.msra.mxu0 %v3442_v9  ;;  %v3466_v9 = vld [vmem:[#allocation10 + $0x90] sm:$0xff]  }
 0x349   :  { %3081 = vmatprep.subr.bf16.mxu0 %v3798_v2 }
 0x34c   :  { %3082 = vmatpush3.bf16.msra.mxu0 %v3443_v10  ;;  %v3467_v10 = vld [vmem:[#allocation10 + $0x98] sm:$0xff]  }
 0x34d   :  { %3083 = vmatprep.subr.bf16.mxu0 %v3798_v2 }
 0x350   :  { %3084 = vmatpush3.bf16.msra.mxu0 %v3444_v11  ;;  %v3468_v11 = vld [vmem:[#allocation10 + $0xa0] sm:$0xff]  }
 0x351   :  { %3085 = vmatprep.subr.bf16.mxu0 %v3798_v2 }
 0x354   :  { %3086 = vmatpush3.bf16.msra.mxu0 %v3445_v12  ;;  %v3469_v12 = vld [vmem:[#allocation10 + $0xa8] sm:$0xff]  }
 0x355   :  { %3087 = vmatprep.subr.bf16.mxu0 %v3798_v2 }
 0x358   :  { %3088 = vmatpush3.bf16.msra.mxu0 %v3446_v13  ;;  %v3470_v13 = vld [vmem:[#allocation10 + $0xb0] sm:$0xff]  }
 0x359   :  { %3113 = vmatprep.subr.bf16.mxu0 %v3798_v2 }
 0x40e   :  { %v625_v20 = vpop.f32.mrb[8].mxu0 }
 0x40f   :  { %v3071_v21 = vpop.f32.mrb[9].mxu0  ;;  %v632_v23 = vadd.f32 %v625_v20, %v574_v0  ;;  %v3485_v20 = vld [vmem:[#allocation11 + $0xa8] sm:$0xff]  }
 0x410   :  { %v628_v22 = vpop.f32.mrb[10].mxu0 }
 0x411   :  { %v633_v24 = vadd.f32 %v628_v22, %v575_v3  ;;  %v3072_v25 = vpop.f32.mrb[11].mxu0 }
 0x413   :  { %v634_v27 = vpack.c.bf16 %v633_v24, %v632_v23 }
 0x415   :  { %3090 = vmatmul.mubr.bf16.vlgmr.msra.gmra.mrb[12].mxu0 %v634_v27  ;;  %v3472_v27 = vld [vmem:[#allocation13 + $0x80] sm:$0xff]  }
 0x416   :  { %3114 = vmatpush3.bf16.msra.mxu0 %v3447_v26  ;;  %3129 = vmatprep.mubr.msk.bf16.mxu0 %vm3799_vm0, %v3798_v2 }
 0x417   :  { %3115 = vmatprep.subr.bf16.mxu0 %v3798_v2 }
 0x41a   :  { %3116 = vmatpush3.bf16.msra.mxu0 %v3448_v28 }
 0x41b   :  { %3117 = vmatprep.subr.bf16.mxu0 %v3798_v2 }
 0x41e   :  { %3118 = vmatpush3.bf16.msra.mxu0 %v3449_v29  ;;  %v3473_v29 = vld [vmem:[#allocation13 + $0x88] sm:$0xff]  }
 0x41f   :  { %3119 = vmatprep.subr.bf16.mxu0 %v3798_v2 }
 0x422   :  { %3120 = vmatpush3.bf16.msra.mxu0 %v3450_v30  ;;  %v3474_v30 = vld [vmem:[#allocation13 + $0x90] sm:$0xff]  }
 0x423   :  { %3121 = vmatprep.subr.bf16.mxu0 %v3798_v2 }
 0x426   :  { %3122 = vmatpush3.bf16.msra.mxu0 %v3451_v31  ;;  %v3475_v31 = vld [vmem:[#allocation13 + $0x98] sm:$0xff]  }
 0x427   :  { %3123 = vmatprep.subr.bf16.mxu0 %v3798_v2 }
 0x42a   :  { %3124 = vmatpush3.bf16.msra.mxu0 %v3452_v32  ;;  %v3476_v32 = vld [vmem:[#allocation13 + $0xa0] sm:$0xff]  }
 0x42b   :  { %3125 = vmatprep.subr.bf16.mxu0 %v3798_v2 }
 0x42e   :  { %3126 = vmatpush3.bf16.msra.mxu0 %v3453_v33  ;;  %v3477_v33 = vld [vmem:[#allocation13 + $0xa8] sm:$0xff]  }
 0x42f   :  { %3127 = vmatprep.subr.bf16.mxu0 %v3798_v2 }
 0x432   :  { %3128 = vmatpush3.bf16.msra.mxu0 %v3454_v34  ;;  %v3478_v34 = vld [vmem:[#allocation13 + $0xb0] sm:$0xff]  }
 0x433   :  { %3159 = vmatprep.subr.bf16.mxu0 %v3798_v2 }
 0x435   :  { %3130 = vmatmul.mubr.bf16.vlgmr.msra.gmra.mrb[16].mxu0 %v4067_v4 }
 0x436   :  { %3175 = vmatprep.mubr.msk.bf16.mxu0 %vm3799_vm0, %v3798_v2  ;;  %3160 = vmatpush3.bf16.msra.mxu0 %v3480_v15  ;;  %v3496_v15 = vld [vmem:[#allocation10 + $0xf8] sm:$0xff]  }
 0x437   :  { %3161 = vmatprep.subr.bf16.mxu0 %v3798_v2 }
 0x43a   :  { %3162 = vmatpush3.bf16.msra.mxu0 %v3481_v16  ;;  %v3505_v16 = vld [vmem:[#allocation11 + $0xc0] sm:$0xff]  }
 0x43b   :  { %3163 = vmatprep.subr.bf16.mxu0 %v3798_v2 }
 0x43e   :  { %3164 = vmatpush3.bf16.msra.mxu0 %v3482_v17  ;;  %v3506_v17 = vld [vmem:[#allocation11 + $0xc8] sm:$0xff]  }
 0x43f   :  { %3165 = vmatprep.subr.bf16.mxu0 %v3798_v2 }
 0x442   :  { %3166 = vmatpush3.bf16.msra.mxu0 %v3483_v18  ;;  %v3507_v18 = vld [vmem:[#allocation11 + $0xd0] sm:$0xff]  }
 0x443   :  { %3167 = vmatprep.subr.bf16.mxu0 %v3798_v2 }
 0x446   :  { %3168 = vmatpush3.bf16.msra.mxu0 %v3484_v19  ;;  %v3508_v19 = vld [vmem:[#allocation11 + $0xd8] sm:$0xff]  }
 0x447   :  { %3169 = vmatprep.subr.bf16.mxu0 %v3798_v2 }
 0x44a   :  { %3170 = vmatpush3.bf16.msra.mxu0 %v3485_v20  ;;  %v3509_v20 = vld [vmem:[#allocation11 + $0xe0] sm:$0xff]  }
 0x44b   :  { %3171 = vmatprep.subr.bf16.mxu0 %v3798_v2 }
 0x44e   :  { %3172 = vmatpush3.bf16.msra.mxu0 %v3486_v36  ;;  %v3504_v36 = vld [vmem:[#allocation13 + $0xf8] sm:$0xff]  }
 0x44f   :  { %3173 = vmatprep.subr.bf16.mxu0 %v3798_v2 }
 0x4e8   :  { %v742_v38 = vpop.f32.mrb[12].mxu0 }
 0x4e9   :  { %v743_v40 = vadd.f32 %v2674_v37, %v742_v38  ;;  %v3091_v41 = vpop.f32.mrb[13].mxu0  ;;  %v2706_v38 = vld [vmem:[%s4296_s4 + $0x2] ss:$0 sm:$0xff] }
 0x4ea   :  { %v745_v42 = vpop.f32.mrb[14].mxu0 }
 0x4eb   :  { %v753_v43 = vmul.f32 %v752_v39, %v743_v40  ;;  %v746_v44 = vadd.f32 %v2674_v37, %v745_v42  ;;  %v3092_v45 = vpop.f32.mrb[15].mxu0  ;;  %vm750_vm6 = vcmp.gt.f32.partialorder %v743_v40, 0.0  ;;  %v3487_v37 = vld [vmem:[#allocation11 + $0xb8] sm:$0xff]  }
 0x4ec   :  { %3174 = vmatpush3.bf16.msra.mxu0 %v3487_v37  ;;  %v3511_v37 = vld [vmem:[#allocation11 + $0xf0] sm:$0xff]  }
 0x4ed   :  { %vm751_vm7 = vcmp.gt.f32.partialorder %v746_v44, 0.0  ;;  %v754_v46 = vmul.f32 %v752_v39, %v746_v44  ;;  %v755_v47 = vsel %vm750_vm6, %v743_v40, %v753_v43  ;;  %3199 = vmatprep.subr.bf16.mxu0 %v3798_v2  ;;  %v1164_v40 = vstv %s2715_s24 }
 0x4ef   :  { %v756_v48 = vsel %vm751_vm7, %v746_v44, %v754_v46 }
 0x4f0   :  { %v757_v49 = vpack.c.bf16 %v756_v48, %v755_v47 }
 0x4f2   :  { %3110 = vmatmul.mubr.bf16.vlgmr.msra.gmra.mrb[8].mxu1 %v757_v49 }
 0x4f3   :  { %3135 = vmatprep.mubr.msk.bf16.mxu1 %vm3799_vm0, %v3798_v2 }
 0x508   :  { %v979_v50 = vpop.f32.mrb[16].mxu0 }
 0x509   :  { %v3131_v51 = vpop.f32.mrb[17].mxu0 }
 0x50a   :  { %v982_v52 = vpop.f32.mrb[18].mxu0 }
 0x50b   :  { %v3132_v53 = vpop.f32.mrb[19].mxu0 }
 0x5c5   :  { %v865_v55 = vpop.f32.mrb[8].mxu1 }
 0x5c6   :  { %v866_v57 = vadd.f32 %v2685_v54, %v865_v55  ;;  %v3111_v58 = vpop.f32.mrb[9].mxu1  ;;  %v2717_v55 = vld [vmem:[%s4298_s6 + $0x2] ss:$0 sm:$0xff] }
 0x5c7   :  { %v868_v59 = vpop.f32.mrb[10].mxu1 }
 0x5c8   :  { %vm873_vm8 = vcmp.gt.f32.partialorder %v866_v57, 0.0  ;;  %v876_v60 = vmul.f32 %v875_v56, %v866_v57  ;;  %v869_v61 = vadd.f32 %v2685_v54, %v868_v59  ;;  %v3112_v62 = vpop.f32.mrb[11].mxu1 }
 0x5ca   :  { %v878_v63 = vsel %vm873_vm8, %v866_v57, %v876_v60  ;;  %vm874_vm9 = vcmp.gt.f32.partialorder %v869_v61, 0.0  ;;  %v877_v0 = vmul.f32 %v875_v56, %v869_v61  ;;  %v1287_v57 = vstv %s2726_s29 }
 0x5cb   :  { %v986_v1 = vadd.f32 %v979_v50, %v878_v63 }
 0x5cc   :  { %v879_v3 = vsel %vm874_vm9, %v869_v61, %v877_v0 }
 0x5cd   :  { %v987_v4 = vadd.f32 %v982_v52, %v879_v3 }
 0x5cf   :  { %v4111_v5 = vpack.c.bf16 %v987_v4, %v986_v1 }
 0x5d1   :  { %3134 = vmatpush3.bf16.msra.mxu1 %v4111_v5 }
 0x5d2   :  { %3139 = vmatprep.subr.bf16.mxu1 %v3798_v2 }
 0x5d4   :  { %3136 = vmatmul.mubr.msk.bf16.vlgmr.msra.gmra.mrb[12].mxu1 %vm180_vm1, %v3463_v6 }
 0x5d5   :  { %3140 = vmatpush3.bf16.msra.mxu1 %v3464_v7  ;;  %3155 = vmatprep.mubr.msk.bf16.mxu1 %vm3799_vm0, %v3798_v2  ;;  %v3488_v7 = vld [vmem:[#allocation7] sm:$0xff]  }
 0x5d6   :  { %3141 = vmatprep.subr.bf16.mxu1 %v3798_v2 }
 0x5d9   :  { %3142 = vmatpush3.bf16.msra.mxu1 %v3465_v8  ;;  %v3489_v8 = vld [vmem:[#allocation10 + $0xc0] sm:$0xff]  }
 0x5da   :  { %3143 = vmatprep.subr.bf16.mxu1 %v3798_v2 }
 0x5dd   :  { %3144 = vmatpush3.bf16.msra.mxu1 %v3466_v9  ;;  %v3490_v9 = vld [vmem:[#allocation10 + $0xc8] sm:$0xff]  }
 0x5de   :  { %3145 = vmatprep.subr.bf16.mxu1 %v3798_v2 }
 0x5e1   :  { %3146 = vmatpush3.bf16.msra.mxu1 %v3467_v10  ;;  %v3491_v10 = vld [vmem:[#allocation10 + $0xd0] sm:$0xff]  }
 0x5e2   :  { %3147 = vmatprep.subr.bf16.mxu1 %v3798_v2 }
 0x5e5   :  { %3148 = vmatpush3.bf16.msra.mxu1 %v3468_v11  ;;  %v3492_v11 = vld [vmem:[#allocation10 + $0xd8] sm:$0xff]  }
 0x5e6   :  { %3149 = vmatprep.subr.bf16.mxu1 %v3798_v2 }
 0x5e9   :  { %3150 = vmatpush3.bf16.msra.mxu1 %v3469_v12  ;;  %v3493_v12 = vld [vmem:[#allocation10 + $0xe0] sm:$0xff]  }
 0x5ea   :  { %3151 = vmatprep.subr.bf16.mxu1 %v3798_v2 }
 0x5ed   :  { %3152 = vmatpush3.bf16.msra.mxu1 %v3470_v13  ;;  %v3494_v13 = vld [vmem:[#allocation10 + $0xe8] sm:$0xff]  }
 0x5ee   :  { %3153 = vmatprep.subr.bf16.mxu1 %v3798_v2 }
 0x5f1   :  { %3154 = vmatpush3.bf16.msra.mxu1 %v3471_v14  ;;  %v3495_v14 = vld [vmem:[#allocation10 + $0xf0] sm:$0xff]  }
 0x5f2   :  { %3179 = vmatprep.subr.bf16.mxu1 %v3798_v2 }
 0x6a7   :  { %v1037_v21 = vpop.f32.mrb[12].mxu1 }
 0x6a8   :  { %v3137_v22 = vpop.f32.mrb[13].mxu1  ;;  %v1044_v24 = vadd.f32 %v1037_v21, %v986_v1  ;;  %v3510_v21 = vld [vmem:[#allocation11 + $0xe8] sm:$0xff]  }
 0x6a9   :  { %v1040_v23 = vpop.f32.mrb[14].mxu1 }
 0x6aa   :  { %v1045_v25 = vadd.f32 %v1040_v23, %v987_v4  ;;  %v3138_v26 = vpop.f32.mrb[15].mxu1 }
 0x6ac   :  { %v1046_v28 = vpack.c.bf16 %v1045_v25, %v1044_v24 }
 0x6ae   :  { %3156 = vmatmul.mubr.bf16.vlgmr.msra.gmra.mrb[16].mxu1 %v1046_v28  ;;  %v3497_v28 = vld [vmem:[#allocation13 + $0xc0] sm:$0xff]  }
 0x6af   :  { %3180 = vmatpush3.bf16.msra.mxu1 %v3472_v27  ;;  %3195 = vmatprep.mubr.msk.bf16.mxu1 %vm3799_vm0, %v3798_v2 }
 0x6b0   :  { %3181 = vmatprep.subr.bf16.mxu1 %v3798_v2 }
 0x6b3   :  { %3182 = vmatpush3.bf16.msra.mxu1 %v3473_v29 }
 0x6b4   :  { %3183 = vmatprep.subr.bf16.mxu1 %v3798_v2 }
 0x6b7   :  { %3184 = vmatpush3.bf16.msra.mxu1 %v3474_v30  ;;  %v3498_v30 = vld [vmem:[#allocation13 + $0xc8] sm:$0xff]  }
 0x6b8   :  { %3185 = vmatprep.subr.bf16.mxu1 %v3798_v2 }
 0x6bb   :  { %3186 = vmatpush3.bf16.msra.mxu1 %v3475_v31  ;;  %v3499_v31 = vld [vmem:[#allocation13 + $0xd0] sm:$0xff]  }
 0x6bc   :  { %3187 = vmatprep.subr.bf16.mxu1 %v3798_v2 }
 0x6bf   :  { %3188 = vmatpush3.bf16.msra.mxu1 %v3476_v32  ;;  %v3500_v32 = vld [vmem:[#allocation13 + $0xd8] sm:$0xff]  }
 0x6c0   :  { %3189 = vmatprep.subr.bf16.mxu1 %v3798_v2 }
 0x6c3   :  { %3190 = vmatpush3.bf16.msra.mxu1 %v3477_v33  ;;  %v3501_v33 = vld [vmem:[#allocation13 + $0xe0] sm:$0xff]  }
 0x6c4   :  { %3191 = vmatprep.subr.bf16.mxu1 %v3798_v2 }
 0x6c7   :  { %3192 = vmatpush3.bf16.msra.mxu1 %v3478_v34  ;;  %v3502_v34 = vld [vmem:[#allocation13 + $0xe8] sm:$0xff]  }
 0x6c8   :  { %3193 = vmatprep.subr.bf16.mxu1 %v3798_v2 }
 0x6cb   :  { %3194 = vmatpush3.bf16.msra.mxu1 %v3479_v35  ;;  %v3503_v35 = vld [vmem:[#allocation13 + $0xf0] sm:$0xff]  }
 0x6cc   :  { %3225 = vmatprep.subr.bf16.mxu1 %v3798_v2 }
 0x6ce   :  { %3196 = vmatmul.mubr.bf16.vlgmr.msra.gmra.mrb[20].mxu1 %v4111_v5 }
 0x6cf   :  { %3241 = vmatprep.mubr.msk.bf16.mxu1 %vm3799_vm0, %v3798_v2  ;;  %3226 = vmatpush3.bf16.msra.mxu1 %v3505_v16  ;;  %v3521_v16 = vld [vmem:[#allocation10 + $0x138] sm:$0xff]  }
 0x6d0   :  { %3227 = vmatprep.subr.bf16.mxu1 %v3798_v2 }
 0x6d3   :  { %3228 = vmatpush3.bf16.msra.mxu1 %v3506_v17  ;;  %v3530_v17 = vld [vmem:[#allocation11 + $0x100] sm:$0xff]  }
 0x6d4   :  { %3229 = vmatprep.subr.bf16.mxu1 %v3798_v2 }
 0x6d7   :  { %3230 = vmatpush3.bf16.msra.mxu1 %v3507_v18  ;;  %v3531_v18 = vld [vmem:[#allocation11 + $0x108] sm:$0xff]  }
 0x6d8   :  { %3231 = vmatprep.subr.bf16.mxu1 %v3798_v2 }
 0x6db   :  { %3232 = vmatpush3.bf16.msra.mxu1 %v3508_v19  ;;  %v3532_v19 = vld [vmem:[#allocation11 + $0x110] sm:$0xff]  }
 0x6dc   :  { %3233 = vmatprep.subr.bf16.mxu1 %v3798_v2 }
 0x6df   :  { %3234 = vmatpush3.bf16.msra.mxu1 %v3509_v20  ;;  %v3533_v20 = vld [vmem:[#allocation11 + $0x118] sm:$0xff]  }
 0x6e0   :  { %3235 = vmatprep.subr.bf16.mxu1 %v3798_v2 }
 0x6e3   :  { %3236 = vmatpush3.bf16.msra.mxu1 %v3510_v21  ;;  %v3534_v21 = vld [vmem:[#allocation11 + $0x120] sm:$0xff]  }
 0x6e4   :  { %3237 = vmatprep.subr.bf16.mxu1 %v3798_v2 }
 0x6e7   :  { %3238 = vmatpush3.bf16.msra.mxu1 %v3511_v37  ;;  %v3529_v37 = vld [vmem:[#allocation13 + $0x138] sm:$0xff]  }
 0x6e8   :  { %3239 = vmatprep.subr.bf16.mxu1 %v3798_v2 }
 0x781   :  { %v1154_v39 = vpop.f32.mrb[16].mxu1 }
 0x782   :  { %v1155_v41 = vadd.f32 %v2706_v38, %v1154_v39  ;;  %v3157_v42 = vpop.f32.mrb[17].mxu1  ;;  %v2738_v39 = vld [vmem:[%s4296_s4 + $0x3] ss:$0 sm:$0xff] }
 0x783   :  { %v1157_v43 = vpop.f32.mrb[18].mxu1 }
 0x784   :  { %v1165_v44 = vmul.f32 %v1164_v40, %v1155_v41  ;;  %v1158_v45 = vadd.f32 %v2706_v38, %v1157_v43  ;;  %v3158_v46 = vpop.f32.mrb[19].mxu1  ;;  %vm1162_vm10 = vcmp.gt.f32.partialorder %v1155_v41, 0.0  ;;  %v3512_v38 = vld [vmem:[#allocation11 + $0xf8] sm:$0xff]  }
 0x785   :  { %3240 = vmatpush3.bf16.msra.mxu1 %v3512_v38  ;;  %v3536_v38 = vld [vmem:[#allocation11 + $0x130] sm:$0xff]  }
 0x786   :  { %vm1163_vm11 = vcmp.gt.f32.partialorder %v1158_v45, 0.0  ;;  %v1166_v47 = vmul.f32 %v1164_v40, %v1158_v45  ;;  %v1167_v48 = vsel %vm1162_vm10, %v1155_v41, %v1165_v44  ;;  %3265 = vmatprep.subr.bf16.mxu1 %v3798_v2  ;;  %v1576_v41 = vstv %s2747_s3 }
 0x788   :  { %v1168_v49 = vsel %vm1163_vm11, %v1158_v45, %v1166_v47 }
 0x789   :  { %v1169_v50 = vpack.c.bf16 %v1168_v49, %v1167_v48 }
 0x78b   :  { %3176 = vmatmul.mubr.bf16.vlgmr.msra.gmra.mrb[20].mxu0 %v1169_v50 }
 0x78c   :  { %3201 = vmatprep.mubr.msk.bf16.mxu0 %vm3799_vm0, %v3798_v2 }
 0x7a1   :  { %v1391_v51 = vpop.f32.mrb[20].mxu1 }
 0x7a2   :  { %v3197_v52 = vpop.f32.mrb[21].mxu1 }
 0x7a3   :  { %v1394_v53 = vpop.f32.mrb[22].mxu1 }
 0x7a4   :  { %v3198_v54 = vpop.f32.mrb[23].mxu1 }
 0x85e   :  { %v1277_v56 = vpop.f32.mrb[20].mxu0 }
 0x85f   :  { %v1278_v58 = vadd.f32 %v2717_v55, %v1277_v56  ;;  %v3177_v59 = vpop.f32.mrb[21].mxu0  ;;  %v2749_v56 = vld [vmem:[%s4298_s6 + $0x3] ss:$0 sm:$0xff] }
 0x860   :  { %v1280_v60 = vpop.f32.mrb[22].mxu0 }
 0x861   :  { %vm1285_vm12 = vcmp.gt.f32.partialorder %v1278_v58, 0.0  ;;  %v1288_v61 = vmul.f32 %v1287_v57, %v1278_v58  ;;  %v1281_v62 = vadd.f32 %v2717_v55, %v1280_v60  ;;  %v3178_v63 = vpop.f32.mrb[23].mxu0 }
 0x863   :  { %v1290_v0 = vsel %vm1285_vm12, %v1278_v58, %v1288_v61  ;;  %vm1286_vm13 = vcmp.gt.f32.partialorder %v1281_v62, 0.0  ;;  %v1289_v1 = vmul.f32 %v1287_v57, %v1281_v62  ;;  %v1699_v58 = vstv %s2758_s5 }
 0x864   :  { %v1398_v3 = vadd.f32 %v1391_v51, %v1290_v0 }
 0x865   :  { %v1291_v4 = vsel %vm1286_vm13, %v1281_v62, %v1289_v1 }
 0x866   :  { %v1399_v5 = vadd.f32 %v1394_v53, %v1291_v4 }
 0x868   :  { %v4155_v6 = vpack.c.bf16 %v1399_v5, %v1398_v3 }
 0x86a   :  { %3200 = vmatpush3.bf16.msra.mxu0 %v4155_v6 }
 0x86b   :  { %3205 = vmatprep.subr.bf16.mxu0 %v3798_v2 }
 0x86d   :  { %3202 = vmatmul.mubr.msk.bf16.vlgmr.msra.gmra.mrb[24].mxu0 %vm180_vm1, %v3488_v7 }
 0x86e   :  { %3206 = vmatpush3.bf16.msra.mxu0 %v3489_v8  ;;  %3221 = vmatprep.mubr.msk.bf16.mxu0 %vm3799_vm0, %v3798_v2  ;;  %v3513_v8 = vld [vmem:[#allocation7] sm:$0xff]  }
 0x86f   :  { %3207 = vmatprep.subr.bf16.mxu0 %v3798_v2 }
 0x872   :  { %3208 = vmatpush3.bf16.msra.mxu0 %v3490_v9  ;;  %v3514_v9 = vld [vmem:[#allocation10 + $0x100] sm:$0xff]  }
 0x873   :  { %3209 = vmatprep.subr.bf16.mxu0 %v3798_v2 }
 0x876   :  { %3210 = vmatpush3.bf16.msra.mxu0 %v3491_v10  ;;  %v3515_v10 = vld [vmem:[#allocation10 + $0x108] sm:$0xff]  }
 0x877   :  { %3211 = vmatprep.subr.bf16.mxu0 %v3798_v2 }
 0x87a   :  { %3212 = vmatpush3.bf16.msra.mxu0 %v3492_v11  ;;  %v3516_v11 = vld [vmem:[#allocation10 + $0x110] sm:$0xff]  }
 0x87b   :  { %3213 = vmatprep.subr.bf16.mxu0 %v3798_v2 }
 0x87e   :  { %3214 = vmatpush3.bf16.msra.mxu0 %v3493_v12  ;;  %v3517_v12 = vld [vmem:[#allocation10 + $0x118] sm:$0xff]  }
 0x87f   :  { %3215 = vmatprep.subr.bf16.mxu0 %v3798_v2 }
 0x882   :  { %3216 = vmatpush3.bf16.msra.mxu0 %v3494_v13  ;;  %v3518_v13 = vld [vmem:[#allocation10 + $0x120] sm:$0xff]  }
 0x883   :  { %3217 = vmatprep.subr.bf16.mxu0 %v3798_v2 }
 0x886   :  { %3218 = vmatpush3.bf16.msra.mxu0 %v3495_v14  ;;  %v3519_v14 = vld [vmem:[#allocation10 + $0x128] sm:$0xff]  }
 0x887   :  { %3219 = vmatprep.subr.bf16.mxu0 %v3798_v2 }
 0x88a   :  { %3220 = vmatpush3.bf16.msra.mxu0 %v3496_v15  ;;  %v3520_v15 = vld [vmem:[#allocation10 + $0x130] sm:$0xff]  }
 0x88b   :  { %3245 = vmatprep.subr.bf16.mxu0 %v3798_v2 }
 0x940   :  { %v1449_v22 = vpop.f32.mrb[24].mxu0 }
 0x941   :  { %v3203_v23 = vpop.f32.mrb[25].mxu0  ;;  %v1456_v25 = vadd.f32 %v1449_v22, %v1398_v3  ;;  %v3535_v22 = vld [vmem:[#allocation11 + $0x128] sm:$0xff]  }
 0x942   :  { %v1452_v24 = vpop.f32.mrb[26].mxu0 }
 0x943   :  { %v1457_v26 = vadd.f32 %v1452_v24, %v1399_v5  ;;  %v3204_v27 = vpop.f32.mrb[27].mxu0 }
 0x945   :  { %v1458_v29 = vpack.c.bf16 %v1457_v26, %v1456_v25 }
 0x947   :  { %3222 = vmatmul.mubr.bf16.vlgmr.msra.gmra.mrb[28].mxu0 %v1458_v29  ;;  %v3522_v29 = vld [vmem:[#allocation13 + $0x100] sm:$0xff]  }
 0x948   :  { %3246 = vmatpush3.bf16.msra.mxu0 %v3497_v28  ;;  %3261 = vmatprep.mubr.msk.bf16.mxu0 %vm3799_vm0, %v3798_v2 }
 0x949   :  { %3247 = vmatprep.subr.bf16.mxu0 %v3798_v2 }
 0x94c   :  { %3248 = vmatpush3.bf16.msra.mxu0 %v3498_v30 }
 0x94d   :  { %3249 = vmatprep.subr.bf16.mxu0 %v3798_v2 }
 0x950   :  { %3250 = vmatpush3.bf16.msra.mxu0 %v3499_v31  ;;  %v3523_v31 = vld [vmem:[#allocation13 + $0x108] sm:$0xff]  }
 0x951   :  { %3251 = vmatprep.subr.bf16.mxu0 %v3798_v2 }
 0x954   :  { %3252 = vmatpush3.bf16.msra.mxu0 %v3500_v32  ;;  %v3524_v32 = vld [vmem:[#allocation13 + $0x110] sm:$0xff]  }
 0x955   :  { %3253 = vmatprep.subr.bf16.mxu0 %v3798_v2 }
 0x958   :  { %3254 = vmatpush3.bf16.msra.mxu0 %v3501_v33  ;;  %v3525_v33 = vld [vmem:[#allocation13 + $0x118] sm:$0xff]  }
 0x959   :  { %3255 = vmatprep.subr.bf16.mxu0 %v3798_v2 }
 0x95c   :  { %3256 = vmatpush3.bf16.msra.mxu0 %v3502_v34  ;;  %v3526_v34 = vld [vmem:[#allocation13 + $0x120] sm:$0xff]  }
 0x95d   :  { %3257 = vmatprep.subr.bf16.mxu0 %v3798_v2 }
 0x960   :  { %3258 = vmatpush3.bf16.msra.mxu0 %v3503_v35  ;;  %v3527_v35 = vld [vmem:[#allocation13 + $0x128] sm:$0xff]  }
 0x961   :  { %3259 = vmatprep.subr.bf16.mxu0 %v3798_v2 }
 0x964   :  { %3260 = vmatpush3.bf16.msra.mxu0 %v3504_v36  ;;  %v3528_v36 = vld [vmem:[#allocation13 + $0x130] sm:$0xff]  }
 0x965   :  { %3291 = vmatprep.subr.bf16.mxu0 %v3798_v2 }
 0x967   :  { %3262 = vmatmul.mubr.bf16.vlgmr.msra.gmra.mrb[32].mxu0 %v4155_v6 }
 0x968   :  { %3307 = vmatprep.mubr.msk.bf16.mxu0 %vm3799_vm0, %v3798_v2  ;;  %3292 = vmatpush3.bf16.msra.mxu0 %v3530_v17  ;;  %v3547_v17 = vld [vmem:[#allocation16] sm:$0xff]  }
 0x969   :  { %3293 = vmatprep.subr.bf16.mxu0 %v3798_v2 }
 0x96c   :  { %3294 = vmatpush3.bf16.msra.mxu0 %v3531_v18  ;;  %v3548_v18 = vld [vmem:[#allocation16 + $0x8] sm:$0xff]  }
 0x96d   :  { %3295 = vmatprep.subr.bf16.mxu0 %v3798_v2 }
 0x970   :  { %3296 = vmatpush3.bf16.msra.mxu0 %v3532_v19  ;;  %v3549_v19 = vld [vmem:[#allocation16 + $0x10] sm:$0xff]  }
 0x971   :  { %3297 = vmatprep.subr.bf16.mxu0 %v3798_v2 }
 0x974   :  { %3298 = vmatpush3.bf16.msra.mxu0 %v3533_v20  ;;  %v3550_v20 = vld [vmem:[#allocation16 + $0x18] sm:$0xff]  }
 0x975   :  { %3299 = vmatprep.subr.bf16.mxu0 %v3798_v2 }
 0x978   :  { %3300 = vmatpush3.bf16.msra.mxu0 %v3534_v21  ;;  %v3551_v21 = vld [vmem:[#allocation16 + $0x20] sm:$0xff]  }
 0x979   :  { %3301 = vmatprep.subr.bf16.mxu0 %v3798_v2 }
 0x97c   :  { %3302 = vmatpush3.bf16.msra.mxu0 %v3535_v22  ;;  %v3552_v22 = vld [vmem:[#allocation16 + $0x28] sm:$0xff]  }
 0x97d   :  { %3303 = vmatprep.subr.bf16.mxu0 %v3798_v2 }
 0x980   :  { %3304 = vmatpush3.bf16.msra.mxu0 %v3536_v38 }
 0x981   :  { %3305 = vmatprep.subr.bf16.mxu0 %v3798_v2 }
 0xa1a   :  { %v1566_v40 = vpop.f32.mrb[28].mxu0 }
 0xa1b   :  { %v1567_v42 = vadd.f32 %v2738_v39, %v1566_v40  ;;  %v3223_v43 = vpop.f32.mrb[29].mxu0  ;;  %v2770_v40 = vld [vmem:[%s4296_s4 + $0x4] ss:$0 sm:$0xff]  ;;  %s2790_s4 = sld [smem:[#allocation3 + $0x9]] }
 0xa1c   :  { %v1569_v44 = vpop.f32.mrb[30].mxu0 }
 0xa1d   :  { %v1577_v45 = vmul.f32 %v1576_v41, %v1567_v42  ;;  %v1570_v46 = vadd.f32 %v2738_v39, %v1569_v44  ;;  %v3224_v47 = vpop.f32.mrb[31].mxu0  ;;  %vm1574_vm14 = vcmp.gt.f32.partialorder %v1567_v42, 0.0  ;;  %v3537_v39 = vld [vmem:[#allocation11 + $0x138] sm:$0xff]  }
 0xa1e   :  { %3306 = vmatpush3.bf16.msra.mxu0 %v3537_v39 }
 0xa1f   :  { %vm1575_vm15 = vcmp.gt.f32.partialorder %v1570_v46, 0.0  ;;  %v1578_v48 = vmul.f32 %v1576_v41, %v1570_v46  ;;  %v1579_v49 = vsel %vm1574_vm14, %v1567_v42, %v1577_v45  ;;  %3331 = vmatprep.subr.bf16.mxu0 %v3798_v2  ;;  %v1988_v42 = vstv %s2779_s11 }
 0xa21   :  { %v1580_v50 = vsel %vm1575_vm15, %v1570_v46, %v1578_v48 }
 0xa22   :  { %v1581_v51 = vpack.c.bf16 %v1580_v50, %v1579_v49 }
 0xa24   :  { %3242 = vmatmul.mubr.bf16.vlgmr.msra.gmra.mrb[24].mxu1 %v1581_v51 }
 0xa25   :  { %3267 = vmatprep.mubr.msk.bf16.mxu1 %vm3799_vm0, %v3798_v2 }
 0xa3a   :  { %v1803_v52 = vpop.f32.mrb[32].mxu0 }
 0xa3b   :  { %v3263_v53 = vpop.f32.mrb[33].mxu0 }
 0xa3c   :  { %v1806_v54 = vpop.f32.mrb[34].mxu0 }
 0xa3d   :  { %v3264_v55 = vpop.f32.mrb[35].mxu0 }
 0xa3e   :  { %v3540_v55 = vld [vmem:[#allocation14 + $0x10] sm:$0xff]  }
 0xaf7   :  { %v1689_v57 = vpop.f32.mrb[24].mxu1 }
 0xaf8   :  { %v1690_v59 = vadd.f32 %v2749_v56, %v1689_v57  ;;  %v3243_v60 = vpop.f32.mrb[25].mxu1  ;;  %v3542_v57 = vld [vmem:[#allocation14 + $0x20] sm:$0xff]  }
 0xaf9   :  { %v1692_v61 = vpop.f32.mrb[26].mxu1 }
 0xafa   :  { %vm1697_vm2 = vcmp.gt.f32.partialorder %v1690_v59, 0.0  ;;  %v1700_v62 = vmul.f32 %v1699_v58, %v1690_v59  ;;  %v1693_v63 = vadd.f32 %v2749_v56, %v1692_v61  ;;  %v3244_v0 = vpop.f32.mrb[27].mxu1  ;;  %v3541_v56 = vld [vmem:[#allocation14 + $0x18] sm:$0xff]  }
 0xafb   :  { %v3545_v0 = vld [vmem:[#allocation14 + $0x38] sm:$0xff]  }
 0xafc   :  { %v1702_v1 = vsel %vm1697_vm2, %v1690_v59, %v1700_v62  ;;  %vm1698_vm3 = vcmp.gt.f32.partialorder %v1693_v63, 0.0  ;;  %v1701_v3 = vmul.f32 %v1699_v58, %v1693_v63  ;;  %v3543_v62 = vld [vmem:[#allocation14 + $0x28] sm:$0xff]  }
 0xafd   :  { %v1810_v4 = vadd.f32 %v1803_v52, %v1702_v1  ;;  %v3538_v52 = vld [vmem:[#allocation14] sm:$0xff]   ;;  %v2781_v1 = vld [vmem:[%s4298_s6 + $0x4] ss:$0 sm:$0xff] }
 0xafe   :  { %v1703_v5 = vsel %vm1698_vm3, %v1693_v63, %v1701_v3  ;;  %v3544_v63 = vld [vmem:[#allocation14 + $0x30] sm:$0xff]  }
 0xaff   :  { %v1811_v6 = vadd.f32 %v1806_v54, %v1703_v5  ;;  %v3539_v54 = vld [vmem:[#allocation14 + $0x8] sm:$0xff]  }
 0xb01   :  { %v4199_v7 = vpack.c.bf16 %v1811_v6, %v1810_v4 }
 0xb03   :  { %3266 = vmatpush3.bf16.msra.mxu1 %v4199_v7 }
 0xb04   :  { %3271 = vmatprep.subr.bf16.mxu1 %v3798_v2 }
 0xb06   :  { %3268 = vmatmul.mubr.msk.bf16.vlgmr.msra.gmra.mrb[28].mxu1 %vm180_vm1, %v3513_v8 }
 0xb07   :  { %3272 = vmatpush3.bf16.msra.mxu1 %v3514_v9  ;;  %3287 = vmatprep.mubr.msk.bf16.mxu1 %vm3799_vm0, %v3798_v2 }
 0xb08   :  { %3273 = vmatprep.subr.bf16.mxu1 %v3798_v2 }
 0xb0b   :  { %3274 = vmatpush3.bf16.msra.mxu1 %v3515_v10 }
 0xb0c   :  { %3275 = vmatprep.subr.bf16.mxu1 %v3798_v2 }
 0xb0f   :  { %3276 = vmatpush3.bf16.msra.mxu1 %v3516_v11 }
 0xb10   :  { %3277 = vmatprep.subr.bf16.mxu1 %v3798_v2 }
 0xb13   :  { %3278 = vmatpush3.bf16.msra.mxu1 %v3517_v12 }
 0xb14   :  { %3279 = vmatprep.subr.bf16.mxu1 %v3798_v2 }
 0xb17   :  { %3280 = vmatpush3.bf16.msra.mxu1 %v3518_v13 }
 0xb18   :  { %3281 = vmatprep.subr.bf16.mxu1 %v3798_v2 }
 0xb1b   :  { %3282 = vmatpush3.bf16.msra.mxu1 %v3519_v14 }
 0xb1c   :  { %3283 = vmatprep.subr.bf16.mxu1 %v3798_v2 }
 0xb1f   :  { %3284 = vmatpush3.bf16.msra.mxu1 %v3520_v15 }
 0xb20   :  { %3285 = vmatprep.subr.bf16.mxu1 %v3798_v2 }
 0xb23   :  { %3286 = vmatpush3.bf16.msra.mxu1 %v3521_v16 }
 0xb24   :  { %3311 = vmatprep.subr.bf16.mxu1 %v3798_v2 }
 0xbd9   :  { %v1861_v23 = vpop.f32.mrb[28].mxu1 }
 0xbda   :  { %v3269_v24 = vpop.f32.mrb[29].mxu1  ;;  %v1868_v26 = vadd.f32 %v1861_v23, %v1810_v4  ;;  %v2111_v4 = vstv %s2790_s4 }
 0xbdb   :  { %v1864_v25 = vpop.f32.mrb[30].mxu1 }
 0xbdc   :  { %v1869_v27 = vadd.f32 %v1864_v25, %v1811_v6  ;;  %v3270_v28 = vpop.f32.mrb[31].mxu1 }
 0xbdd   :  { %v3546_v28 = vld [vmem:[#allocation7] sm:$0xff]  }
 0xbde   :  { %v1870_v30 = vpack.c.bf16 %v1869_v27, %v1868_v26 }
 0xbe0   :  { %3288 = vmatmul.mubr.bf16.vlgmr.msra.gmra.mrb[32].mxu1 %v1870_v30  ;;  %v3554_v30 = vld [vmem:[#allocation16 + $0x38] sm:$0xff]  }
 0xbe1   :  { %3312 = vmatpush3.bf16.msra.mxu1 %v3522_v29  ;;  %3327 = vmatprep.mubr.msk.bf16.mxu1 %vm3799_vm0, %v3798_v2  ;;  %v3553_v29 = vld [vmem:[#allocation16 + $0x30] sm:$0xff]  }
 0xbe2   :  { %3313 = vmatprep.subr.bf16.mxu1 %v3798_v2 }
 0xbe5   :  { %3314 = vmatpush3.bf16.msra.mxu1 %v3523_v31  ;;  %v3555_v31 = vld [vmem:[#allocation17] sm:$0xff]  }
 0xbe6   :  { %3315 = vmatprep.subr.bf16.mxu1 %v3798_v2 }
 0xbe9   :  { %3316 = vmatpush3.bf16.msra.mxu1 %v3524_v32  ;;  %v3556_v32 = vld [vmem:[#allocation17 + $0x8] sm:$0xff]  }
 0xbea   :  { %3317 = vmatprep.subr.bf16.mxu1 %v3798_v2 }
 0xbed   :  { %3318 = vmatpush3.bf16.msra.mxu1 %v3525_v33  ;;  %v3557_v33 = vld [vmem:[#allocation17 + $0x10] sm:$0xff]  }
 0xbee   :  { %3319 = vmatprep.subr.bf16.mxu1 %v3798_v2 }
 0xbf1   :  { %3320 = vmatpush3.bf16.msra.mxu1 %v3526_v34  ;;  %v3558_v34 = vld [vmem:[#allocation17 + $0x18] sm:$0xff]  }
 0xbf2   :  { %3321 = vmatprep.subr.bf16.mxu1 %v3798_v2 }
 0xbf5   :  { %3322 = vmatpush3.bf16.msra.mxu1 %v3527_v35  ;;  %v3559_v35 = vld [vmem:[#allocation17 + $0x20] sm:$0xff]  }
 0xbf6   :  { %3323 = vmatprep.subr.bf16.mxu1 %v3798_v2 }
 0xbf9   :  { %3324 = vmatpush3.bf16.msra.mxu1 %v3528_v36  ;;  %v3560_v36 = vld [vmem:[#allocation17 + $0x28] sm:$0xff]  }
 0xbfa   :  { %3325 = vmatprep.subr.bf16.mxu1 %v3798_v2 }
 0xbfd   :  { %3326 = vmatpush3.bf16.msra.mxu1 %v3529_v37 }
 0xbfe   :  { %3351 = vmatprep.subr.bf16.mxu1 %v3798_v2 }
 0xc00   :  { %3328 = vmatmul.mubr.bf16.vlgmr.msra.gmra.mrb[36].mxu1 %v4199_v7 }
 0xc01   :  { %3353 = vmatprep.mubr.msk.bf16.mxu1 %vm3799_vm0, %v3798_v2 }
 0xcb3   :  { %v1978_v41 = vpop.f32.mrb[32].mxu1 }
 0xcb4   :  { %v1979_v43 = vadd.f32 %v2770_v40, %v1978_v41  ;;  %v3289_v44 = vpop.f32.mrb[33].mxu1 }
 0xcb5   :  { %v1981_v45 = vpop.f32.mrb[34].mxu1  ;;  %v3561_v44 = vld [vmem:[#allocation17 + $0x30] sm:$0xff]  }
 0xcb6   :  { %v1989_v46 = vmul.f32 %v1988_v42, %v1979_v43  ;;  %v1982_v47 = vadd.f32 %v2770_v40, %v1981_v45  ;;  %v3290_v48 = vpop.f32.mrb[35].mxu1  ;;  %vm1986_vm4 = vcmp.gt.f32.partialorder %v1979_v43, 0.0  ;;  %v3562_v45 = vld [vmem:[#allocation17 + $0x38] sm:$0xff]  }
 0xcb8   :  { %vm1987_vm5 = vcmp.gt.f32.partialorder %v1982_v47, 0.0  ;;  %v1990_v49 = vmul.f32 %v1988_v42, %v1982_v47  ;;  %v1991_v50 = vsel %vm1986_vm4, %v1979_v43, %v1989_v46  ;;  %v2809_v46 = vld [vmem:[%s4302_s10] ss:$0 sm:$0xff]  ;;  %s3749_s10 = scalar_lea.vmem %s2626_s0, 256 }
 0xcb9   :  { %p3750_p11 = scmp.ne.s32.totalorder %s2626_s0, %s3749_s10  ;;  %p3755_p13 = scmp.lt.s32.totalorder %s3749_s10, %s3749_s10 }
 0xcba   :  { %v1992_v51 = vsel %vm1987_vm5, %v1982_v47, %v1990_v49 }
 0xcbb   :  { %v1993_v53 = vpack.c.bf16 %v1992_v51, %v1991_v50  ;;  %p3756_p0 = por %p3755_p13, %p3754_p12 }
 0xcbd   :  { %3308 = vmatmul.mubr.bf16.vlgmr.msra.gmra.mrb[36].mxu0 %v1993_v53  ;;  %p3757_p1 = pnand %p3756_p0, %p3750_p11 }
 0xcbe   :  { %3332 = vmatpush3.bf16.msra.mxu0 %v3538_v52  ;;  %3347 = vmatprep.mubr.msk.bf16.mxu0 %vm3799_vm0, %v3798_v2 }
 0xcbf   :  { %3333 = vmatprep.subr.bf16.mxu0 %v3798_v2 }
 0xcc2   :  { %3334 = vmatpush3.bf16.msra.mxu0 %v3539_v54  ;;  %v2818_v54 = vld [vmem:[%s4304_s12] ss:$0 sm:$0xff] }
 0xcc3   :  { %3335 = vmatprep.subr.bf16.mxu0 %v3798_v2 }
 0xcc6   :  { %3336 = vmatpush3.bf16.msra.mxu0 %v3540_v55 }
 0xcc7   :  { %3337 = vmatprep.subr.bf16.mxu0 %v3798_v2 }
 0xcca   :  { %3338 = vmatpush3.bf16.msra.mxu0 %v3541_v56 }
 0xccb   :  { %3339 = vmatprep.subr.bf16.mxu0 %v3798_v2 }
 0xcce   :  { %3340 = vmatpush3.bf16.msra.mxu0 %v3542_v57 }
 0xccf   :  { %3341 = vmatprep.subr.bf16.mxu0 %v3798_v2 }
 0xcd2   :  { %3342 = vmatpush3.bf16.msra.mxu0 %v3543_v62 }
 0xcd3   :  { %v2215_v58 = vpop.f32.mrb[36].mxu1  ;;  %3343 = vmatprep.subr.bf16.mxu0 %v3798_v2 }
 0xcd4   :  { %v3329_v59 = vpop.f32.mrb[37].mxu1 }
 0xcd5   :  { %v2218_v60 = vpop.f32.mrb[38].mxu1 }
 0xcd6   :  { %v3330_v61 = vpop.f32.mrb[39].mxu1  ;;  %3344 = vmatpush3.bf16.msra.mxu0 %v3544_v63 }
 0xcd7   :  { %3345 = vmatprep.subr.bf16.mxu0 %v3798_v2 }
 0xcda   :  { %3346 = vmatpush3.bf16.msra.mxu0 %v3545_v0 }
 0xcdb   :  { %3357 = vmatprep.subr.bf16.mxu0 %v3798_v2 }
 0xd90   :  { %v2101_v3 = vpop.f32.mrb[36].mxu0 }
 0xd91   :  { %v2102_v5 = vadd.f32 %v2781_v1, %v2101_v3  ;;  %v3309_v6 = vpop.f32.mrb[37].mxu0 }
 0xd92   :  { %v2104_v7 = vpop.f32.mrb[38].mxu0 }
 0xd93   :  { %vm2109_vm6 = vcmp.gt.f32.partialorder %v2102_v5, 0.0  ;;  %v2112_v8 = vmul.f32 %v2111_v4, %v2102_v5  ;;  %v2105_v9 = vadd.f32 %v2781_v1, %v2104_v7  ;;  %v3310_v10 = vpop.f32.mrb[39].mxu0 }
 0xd95   :  { %v2114_v11 = vsel %vm2109_vm6, %v2102_v5, %v2112_v8  ;;  %vm2110_vm7 = vcmp.gt.f32.partialorder %v2105_v9, 0.0  ;;  %v2113_v12 = vmul.f32 %v2111_v4, %v2105_v9 }
 0xd96   :  { %v2222_v13 = vadd.f32 %v2215_v58, %v2114_v11 }
 0xd97   :  { %v2115_v14 = vsel %vm2110_vm7, %v2105_v9, %v2113_v12 }
 0xd98   :  { %v2223_v15 = vadd.f32 %v2218_v60, %v2115_v14 }
 0xd9a   :  { %v2228_v16 = vpack.c.bf16 %v2223_v15, %v2222_v13 }
 0xd9c   :  { %3348 = vmatmul.mubr.bf16.vlgmr.msra.gmra.mrb[40].mxu0 %v2228_v16 }
 0xd9d   :  { %3373 = vmatprep.mubr.msk.bf16.mxu0 %vm3799_vm0, %v3798_v2  ;;  %3358 = vmatpush3.bf16.msra.mxu0 %v3547_v17 }
 0xd9e   :  { %3359 = vmatprep.subr.bf16.mxu0 %v3798_v2 }
 0xda1   :  { %3360 = vmatpush3.bf16.msra.mxu0 %v3548_v18 }
 0xda2   :  { %3361 = vmatprep.subr.bf16.mxu0 %v3798_v2 }
 0xda5   :  { %3362 = vmatpush3.bf16.msra.mxu0 %v3549_v19 }
 0xda6   :  { %3363 = vmatprep.subr.bf16.mxu0 %v3798_v2 }
 0xda9   :  { %3364 = vmatpush3.bf16.msra.mxu0 %v3550_v20 }
 0xdaa   :  { %3365 = vmatprep.subr.bf16.mxu0 %v3798_v2 }
 0xdad   :  { %3366 = vmatpush3.bf16.msra.mxu0 %v3551_v21 }
 0xdae   :  { %3367 = vmatprep.subr.bf16.mxu0 %v3798_v2 }
 0xdb1   :  { %3368 = vmatpush3.bf16.msra.mxu0 %v3552_v22 }
 0xdb2   :  { %3369 = vmatprep.subr.bf16.mxu0 %v3798_v2 }
 0xdb5   :  { %3370 = vmatpush3.bf16.msra.mxu0 %v3553_v29 }
 0xdb6   :  { %3371 = vmatprep.subr.bf16.mxu0 %v3798_v2 }
 0xdb9   :  { %3372 = vmatpush3.bf16.msra.mxu0 %v3554_v30 }
 0xe6f   :  { %v2327_v23 = vpop.f32.mrb[40].mxu0 }
 0xe70   :  { %v3349_v24 = vpop.f32.mrb[41].mxu0 }
 0xe71   :  { %v2330_v25 = vpop.f32.mrb[42].mxu0 }
 0xe72   :  { %v2340_v26 = vpack.c.bf16 %v2330_v25, %v2327_v23  ;;  %v3350_v27 = vpop.f32.mrb[43].mxu0 }
 0xe74   :  { %3352 = vmatpush3.bf16.msra.mxu1 %v2340_v26 }
 0xe75   :  { %3377 = vmatprep.subr.bf16.mxu1 %v3798_v2 }
 0xe77   :  { %3354 = vmatmul.mubr.msk.bf16.vlgmr.msra.gmra.mrb[40].mxu1 %vm180_vm1, %v3546_v28 }
 0xe78   :  { %3393 = vmatprep.mubr.msk.bf16.mxu1 %vm3799_vm0, %v3798_v2  ;;  %3378 = vmatpush3.bf16.msra.mxu1 %v3555_v31 }
 0xe79   :  { %3379 = vmatprep.subr.bf16.mxu1 %v3798_v2 }
 0xe7c   :  { %3380 = vmatpush3.bf16.msra.mxu1 %v3556_v32 }
 0xe7d   :  { %3381 = vmatprep.subr.bf16.mxu1 %v3798_v2 }
 0xe80   :  { %3382 = vmatpush3.bf16.msra.mxu1 %v3557_v33 }
 0xe81   :  { %3383 = vmatprep.subr.bf16.mxu1 %v3798_v2 }
 0xe84   :  { %3384 = vmatpush3.bf16.msra.mxu1 %v3558_v34 }
 0xe85   :  { %3385 = vmatprep.subr.bf16.mxu1 %v3798_v2 }
 0xe88   :  { %3386 = vmatpush3.bf16.msra.mxu1 %v3559_v35 }
 0xe89   :  { %3387 = vmatprep.subr.bf16.mxu1 %v3798_v2 }
 0xe8c   :  { %3388 = vmatpush3.bf16.msra.mxu1 %v3560_v36 }
 0xe8d   :  { %3389 = vmatprep.subr.bf16.mxu1 %v3798_v2 }
 0xe90   :  { %3390 = vmatpush3.bf16.msra.mxu1 %v3561_v44 }
 0xe91   :  { %3391 = vmatprep.subr.bf16.mxu1 %v3798_v2 }
 0xe94   :  { %3392 = vmatpush3.bf16.msra.mxu1 %v3562_v45 }
 0xf4a   :  { %v2383_v37 = vpop.f32.mrb[40].mxu1 }
 0xf4b   :  { %v2390_v38 = vadd.f32 %v2383_v37, %v2327_v23  ;;  %v3355_v39 = vpop.f32.mrb[41].mxu1 }
 0xf4c   :  { %v2386_v40 = vpop.f32.mrb[42].mxu1 }
 0xf4d   :  { %v2391_v41 = vadd.f32 %v2386_v40, %v2330_v25  ;;  %v3356_v42 = vpop.f32.mrb[43].mxu1 }
 0xf4f   :  { %v2392_v43 = vpack.c.bf16 %v2391_v41, %v2390_v38 }
 0xf51   :  { %3374 = vmatmul.mubr.bf16.vlgmr.msra.gmra.mrb[44].mxu0 %v2392_v43 }
0x1024   :  { %v2498_v47 = vpop.f32.mrb[44].mxu0 }
0x1025   :  { %v3375_v48 = vpop.f32.mrb[45].mxu0  ;;  %v2499_v50 = vadd.f32 %v2809_v46, %v2498_v47 }
0x1026   :  { %v2501_v49 = vpop.f32.mrb[46].mxu0 }
0x1027   :  { %v2502_v51 = vadd.f32 %v2809_v46, %v2501_v49  ;;  %v3376_v52 = vpop.f32.mrb[47].mxu0 }
0x1029   :  { %v2505_v53 = vpack.c.bf16 %v2502_v51, %v2499_v50 }
0x102b   :  { %3394 = vmatmul.mubr.bf16.vlgmr.msra.gmra.mrb[44].mxu1 %v2505_v53 }
0x10fe   :  { %v2611_v55 = vpop.f32.mrb[44].mxu1 }
0x10ff   :  { %v2612_v2 = vadd.f32 %v2818_v54, %v2611_v55  ;;  %v3395_v56 = vpop.f32.mrb[45].mxu1 }
0x1100   :  { %v2614_v57 = vpop.f32.mrb[46].mxu1 }
0x1101   :  { %2618 = vst [vmem:[#allocation19] sm:$0xff] %v2612_v2  ;;  %v2615_v58 = vadd.f32 %v2818_v54, %v2614_v57  ;;  %v3396_v59 = vpop.f32.mrb[47].mxu1 }
0x1103   :  { %2619 = vst [vmem:[#allocation19 + $0x8] sm:$0xff] %v2615_v58 }
0x1104   :  { %3760 = shalt.err (!%p3757_p1)
}
0x1105   :  { %s3761_s20 = scalar_lea.hbm %s4305_s13, 256 }
0x1106   :  { %p3762_p2 = scmp.ne.s32.totalorder %s4305_s13, %s3761_s20  ;;  %p3765_p3 = scmp.lt.u32.totalorder %s3761_s20, %s4305_s13 }
0x1108   :  { %p3767_p4 = pnand %p3765_p3, %p3762_p2 }
0x110a   :  { %3770 = shalt.err (!%p3767_p4)
}
0x110b   :  { %2631 = dma.vmem_to_hbm [thread:$0]  %s2626_s0, 256, %s4305_s13, [#allocation5], %s3786_s18, %s3786_s18, %s3787_s19  }
0x110c   :  { %3783 = dma.done.wait [#allocation5], 256  }
0x110d   :  { %3784 = vsyncadd [#allocation5], 4294967040 }
0x110e   :  { %2635 = vsyncpa [#allocation4], 1 }
0x110f   :  { %2636 = vsyncpa [#allocation9], 1 }
0x1110   :  { %2637 = vsyncpa [#allocation12], 1 }
0x1111   :  { %2638 = vsyncpa [#allocation15], 1 }
0x1112   :  { %2639 = vsyncpa [#allocation18], 1 }
0x1113   :  { %2640 = vsyncpa [#allocation5], 1 }
0x1114   :  { %2641 = vsyncpa [#allocation6], 1 }

</bundles_post_ra>
